<compile_context>
chip_gen: v7x
topology: tpu7x:2x2x1
jax: 0.10.0
libtpu: 0.0.40
codegen_flags: <defaults>
</compile_context>

<pallas_src>
import math

import jax
import jax.numpy as jnp
from jax.experimental import pallas as pl
from jax.experimental.pallas import tpu as pltpu


IGNORE_INDEX = -100  # nn.CrossEntropyLoss default


def _gelu(x):
    # tanh-approx GELU. TODO(synk): nn.GELU() default is the exact erf form.
    c = math.sqrt(2.0 / math.pi)
    return 0.5 * x * (1.0 + jnp.tanh(c * (x + 0.044715 * x * x * x)))


def _vmem():
    return pl.BlockSpec(memory_space=pltpu.MemorySpace.VMEM)


def _smem():
    return pl.BlockSpec(memory_space=pltpu.MemorySpace.SMEM)


def _round8(n):
    return ((n + 7) // 8) * 8


# --------------------------- fused forward kernel ----------------------------
def vlm_fused_kernel(
    flag_ref,     # SMEM (1,) i32: 1 => compute cross-entropy, 0 => skip
    pix_ref,      # [B_pad, C*H*W]  f32 (rows >= B zero-padded)
    ids_ref,      # [BS_pad, 1]     i32 prompt token ids (pad rows = 0)
    attn_ref,     # [BS_pad, 1]     f32 attention mask     (pad rows = 0)
    labels_ref,   # [BS_pad, 1]     i32 labels             (pad rows = -100)
    wv_ref, bv_ref,                        # vision-encoder stub linear (bf16 / f32)
    emb_ref,                               # [vocab, llm_dim] bf16 frozen embed_tokens
    fw1_ref, fb1_ref, fw2_ref, fb2_ref,    # fusion_mlp
    lw_ref, lb_ref,                        # frozen LLM stub
    ow1_ref, ob1_ref, ow2_ref, ob2_ref,    # output_mlp
    logits_ref,   # out [BS_pad + B_pad, vocab] f32: rows [0:BS_pad]=prompt, [BS_pad:]=vision
    loss_ref,     # out [8, 128] f32, scalar loss broadcast to a full tile
):
    f32 = jnp.float32
    bf16 = jnp.bfloat16
    BS_pad = ids_ref.shape[0]
    V = ow2_ref.shape[1]

    def mm(x, w):
        # bf16 MXU operands (weights already bf16), f32 accumulation.
        return jnp.dot(x.astype(bf16), w, preferred_element_type=f32)

    # ---- vision tower stub: flattened pixels -> linear -> [B_pad, vision_dim]
    # TODO(synk): CLIP-ViT patch embedding + transformer not reproducible here.
    vis = mm(pix_ref[...], wv_ref[...]) + bv_ref[...]

    # ---- fusion_mlp: Linear -> GELU -> Linear -> [B_pad, llm_dim]
    vis_proj = (mm(_gelu(mm(vis, fw1_ref[...]) + fb1_ref[...]), fw2_ref[...])
                + fb2_ref[...])

    # ---- prompt embedding gather as a bf16 one-hot matmul (exact, MXU path).
    # TODO(synk): at real vocab sizes this becomes a scalar-prefetch DMA gather.
    ids = ids_ref[...]                                              # [BS_pad, 1]
    col = jax.lax.broadcasted_iota(jnp.int32, (BS_pad, V), 1)       # [BS_pad, V]
    onehot = (col == ids).astype(bf16)
    prompt_emb = jnp.dot(onehot, emb_ref[...], preferred_element_type=f32)

    # ---- apply attention mask (the visual token's mask is always 1)
    prompt_x = prompt_emb * attn_ref[...]                           # [BS_pad, D]

    # ---- merged frozen-LLM stub + output_mlp over ALL rows at once.
    # TODO(synk): real Llama-3.2 decoder (attention + RoPE + RMSNorm) needs
    # pretrained weights; this is a deterministic token-wise stub.
    x_all = jnp.concatenate([prompt_x, vis_proj], axis=0)   # 8-aligned blocks
    h = x_all + _gelu(mm(x_all, lw_ref[...]) + lb_ref[...])
    g = _gelu(mm(h, ow1_ref[...]) + ob1_ref[...])
    logits_all = mm(g, ow2_ref[...]) + ob2_ref[...]          # [NR_pad, V] f32

    # ---- single aligned, lane-dense full-tile store of all logits
    logits_ref[...] = logits_all

    # ---- cross-entropy: action[:, 1:, :] (== prompt-row logits, matching the
    # reference's shift) vs target, mean over valid rows (ignore_index=-100).
    logits_prm = logits_all[:BS_pad]

    @pl.when(flag_ref[0] != 0)
    def _():
        lbl = labels_ref[...]                                        # [BS_pad, 1]
        valid = (lbl != IGNORE_INDEX).astype(f32)
        m = jnp.max(logits_prm, axis=-1, keepdims=True)
        lse = jnp.log(jnp.sum(jnp.exp(logits_prm - m), axis=-1, keepdims=True)) + m
        picked = jnp.sum(jnp.where(col == lbl, logits_prm, 0.0),
                         axis=-1, keepdims=True)
        row_loss = valid * (lse - picked)                            # [BS_pad, 1]
        n_valid = jnp.sum(valid, axis=0, keepdims=True)              # (1, 1)
        # No clamp: all-ignored batch => 0/0 => NaN, matching PyTorch.
        loss11 = jnp.sum(row_loss, axis=0, keepdims=True) / n_valid
        loss_ref[...] = jnp.broadcast_to(loss11, loss_ref.shape)

    @pl.when(flag_ref[0] == 0)
    def _():
        loss_ref[...] = jnp.zeros_like(loss_ref)


# ------------------------------- wrapper -------------------------------------
def vlm_fused_forward(flag, pix_pad, ids_pad, attn_pad, labels_pad, params):
    """Single pallas_call for the whole forward. Returns (logits2d, loss_tile)."""
    wv, bv, emb, fw1, fb1, fw2, fb2, lw, lb, ow1, ob1, ow2, ob2 = params
    B_pad, F = pix_pad.shape
    BS_pad = ids_pad.shape[0]
    Dv = wv.shape[1]
    Df = fw1.shape[1]
    D = fw2.shape[1]
    Do = ow1.shape[1]
    V = ow2.shape[1]
    NR_pad = BS_pad + B_pad

    # Advisory cost estimate for the XLA scheduler.
    mmf = lambda m, k, n: 2 * m * k * n
    flops = (mmf(B_pad, F, Dv) + mmf(B_pad, Dv, Df) + mmf(B_pad, Df, D)
             + mmf(BS_pad, V, D)
             + mmf(NR_pad, D, D) + mmf(NR_pad, D, Do) + mmf(NR_pad, Do, V))
    transcendentals = B_pad * Df + NR_pad * D + NR_pad * Do + BS_pad * V

    inputs = (flag, pix_pad, ids_pad, attn_pad, labels_pad,
              wv, bv, emb, fw1, fb1, fw2, fb2, lw, lb, ow1, ob1, ow2, ob2)
    bytes_accessed = sum(int(x.size) * x.dtype.itemsize for x in inputs)
    bytes_accessed += (NR_pad * V + 8 * 128) * 4

    out_shapes = (jax.ShapeDtypeStruct((NR_pad, V), jnp.float32),
                  jax.ShapeDtypeStruct((8, 128), jnp.float32))

    # TODO(synk): at real B*S add a leading "parallel" row-grid axis here
    # (dimension_semantics=("parallel",)) so v7x's second TensorCore is used.
    return pl.pallas_call(
        vlm_fused_kernel,
        out_shape=out_shapes,
        in_specs=[_smem()] + [_vmem() for _ in inputs[1:]],
        out_specs=(_vmem(), _vmem()),
        cost_estimate=pl.CostEstimate(flops=int(flops),
                                      transcendentals=int(transcendentals),
                                      bytes_accessed=int(bytes_accessed)),
    )(*inputs)


def _pad_rows(x, rows, value=0):
    pad = rows - x.shape[0]
    if pad == 0:
        return x
    return jnp.pad(x, ((0, pad), (0, 0)), constant_values=value)


# -------------------------------- model --------------------------------------
class VLMFineTuningPallas:
    def __init__(self, key, *, img_c=3, img_hw=16, vision_dim=128, llm_dim=128,
                 fusion_dim=128, output_dim=128, vocab_size=128):
        self.vision_dim = vision_dim
        self.llm_dim = llm_dim
        self.vocab_size = vocab_size

        ks = jax.random.split(key, 10)
        scale = 0.02
        pix_feat = img_c * img_hw * img_hw
        bf16 = jnp.bfloat16

        # Weight matrices are pre-cast to bf16 ONCE (MXU sees bf16 anyway);
        # biases stay f32 since they feed f32 elementwise math.

        # vision-encoder stub (stand-in for frozen CLIP ViT).
        # TODO(synk): full CLIP-ViT not reproducible without pretrained weights.
        self.w_vis = (jax.random.normal(ks[0], (pix_feat, vision_dim), jnp.float32) * scale).astype(bf16)
        self.b_vis = jnp.zeros((1, vision_dim), jnp.float32)

        # frozen LLM token embedding table (stand-in for Llama embed_tokens).
        self.embed_tokens = (jax.random.normal(ks[1], (vocab_size, llm_dim), jnp.float32) * scale).astype(bf16)

        # fusion_mlp: Linear(vision_dim, fusion_dim) -> GELU -> Linear(fusion_dim, llm_dim)
        self.fw1 = (jax.random.normal(ks[2], (vision_dim, fusion_dim), jnp.float32) * scale).astype(bf16)
        self.fb1 = jnp.zeros((1, fusion_dim), jnp.float32)
        self.fw2 = (jax.random.normal(ks[3], (fusion_dim, llm_dim), jnp.float32) * scale).astype(bf16)
        self.fb2 = jnp.zeros((1, llm_dim), jnp.float32)

        # frozen LLM body stub weights
        self.lw = (jax.random.normal(ks[4], (llm_dim, llm_dim), jnp.float32) * scale).astype(bf16)
        self.lb = jnp.zeros((1, llm_dim), jnp.float32)

        # output_mlp: Linear(llm_dim, output_dim) -> GELU -> Linear(output_dim, vocab)
        self.ow1 = (jax.random.normal(ks[5], (llm_dim, output_dim), jnp.float32) * scale).astype(bf16)
        self.ob1 = jnp.zeros((1, output_dim), jnp.float32)
        self.ow2 = (jax.random.normal(ks[6], (output_dim, vocab_size), jnp.float32) * scale).astype(bf16)
        self.ob2 = jnp.zeros((1, vocab_size), jnp.float32)

        self.params = (self.w_vis, self.b_vis, self.embed_tokens,
                       self.fw1, self.fb1, self.fw2, self.fb2,
                       self.lw, self.lb,
                       self.ow1, self.ob1, self.ow2, self.ob2)

    def __call__(self, pixel, prompt, attention_mask, target=None):
        B = pixel.shape[0]
        S = prompt.shape[1]
        BS = B * S
        B_pad = _round8(B)
        BS_pad = _round8(BS)

        pix_pad = _pad_rows(pixel.reshape(B, -1).astype(jnp.float32), B_pad, 0.0)
        ids_pad = _pad_rows(prompt.reshape(BS, 1).astype(jnp.int32), BS_pad, 0)
        attn_pad = _pad_rows(attention_mask.reshape(BS, 1).astype(jnp.float32), BS_pad, 0.0)
        if target is not None:
            labels_pad = _pad_rows(target.reshape(BS, 1).astype(jnp.int32),
                                   BS_pad, IGNORE_INDEX)
            flag = jnp.ones((1,), jnp.int32)
        else:
            labels_pad = jnp.full((BS_pad, 1), IGNORE_INDEX, jnp.int32)  # dummy
            flag = jnp.zeros((1,), jnp.int32)   # CE skipped in-kernel via pl.when

        logits2d, loss_tile = vlm_fused_forward(
            flag, pix_pad, ids_pad, attn_pad, labels_pad, self.params)

        # Reassemble PyTorch-shaped action [B, S+1, V]: vision token at t=0.
        prm = logits2d[:BS].reshape(B, S, self.vocab_size)
        vis = logits2d[BS_pad:BS_pad + B].reshape(B, 1, self.vocab_size)
        action = jnp.concatenate([vis, prm], axis=1)

        if target is not None:
            return {"loss": loss_tile[0, 0], "logits": action}
        return action[:, 1:, :]


# --------------------------------- main ---------------------------------------
if __name__ == "__main__":
    key = jax.random.PRNGKey(0)
    k_model, k_pix, k_prompt, k_target = jax.random.split(key, 4)

    B, C, HW, S, VOCAB = 2, 3, 16, 8, 128
    model = VLMFineTuningPallas(k_model, img_c=C, img_hw=HW, vocab_size=VOCAB)

    pixel = jax.random.normal(k_pix, (B, C, HW, HW), jnp.float32)
    prompt = jax.random.randint(k_prompt, (B, S), 0, VOCAB, jnp.int32)
    attention_mask = jnp.ones((B, S), jnp.int32)
    target = jax.random.randint(k_target, (B, S), 0, VOCAB, jnp.int32)

    out = model(pixel, prompt, attention_mask, target)
    jax.block_until_ready(out["loss"])
    jax.block_until_ready(out["logits"])

    assert out["logits"].shape == (B, S + 1, VOCAB)
    assert out["loss"].shape == ()

    # inference path (target=None): CE block skipped in-kernel
    gen = model(pixel, prompt, attention_mask, None)
    jax.block_until_ready(gen)
    assert gen.shape == (B, S, VOCAB)

    print("KERNEL_OK")
</pallas_src>

<mosaic_0001>
module attributes {stable_mosaic.version = 11 : i64} {
  func.func @vlm_fused_kernel(%arg0: memref<1xi32, #tpu.memory_space<smem>>, %arg1: memref<8x768xf32, #tpu.memory_space<vmem>>, %arg2: memref<16x1xi32, #tpu.memory_space<vmem>>, %arg3: memref<16x1xf32, #tpu.memory_space<vmem>>, %arg4: memref<16x1xi32, #tpu.memory_space<vmem>>, %arg5: memref<768x128xbf16, #tpu.memory_space<vmem>>, %arg6: memref<1x128xf32, #tpu.memory_space<vmem>>, %arg7: memref<128x128xbf16, #tpu.memory_space<vmem>>, %arg8: memref<128x128xbf16, #tpu.memory_space<vmem>>, %arg9: memref<1x128xf32, #tpu.memory_space<vmem>>, %arg10: memref<128x128xbf16, #tpu.memory_space<vmem>>, %arg11: memref<1x128xf32, #tpu.memory_space<vmem>>, %arg12: memref<128x128xbf16, #tpu.memory_space<vmem>>, %arg13: memref<1x128xf32, #tpu.memory_space<vmem>>, %arg14: memref<128x128xbf16, #tpu.memory_space<vmem>>, %arg15: memref<1x128xf32, #tpu.memory_space<vmem>>, %arg16: memref<128x128xbf16, #tpu.memory_space<vmem>>, %arg17: memref<1x128xf32, #tpu.memory_space<vmem>>, %arg18: memref<24x128xf32, #tpu.memory_space<vmem>>, %arg19: memref<8x128xf32, #tpu.memory_space<vmem>>) attributes {dimension_semantics = [], scalar_prefetch = 0 : i64, scratch_operands = 0 : i64, tpu.core_type = #tpu.core_type<tc>} {
    %c0 = arith.constant 0 : index
    %c0_0 = arith.constant 0 : index
    %0 = vector.load %arg1[%c0, %c0_0] : memref<8x768xf32, #tpu.memory_space<vmem>>, vector<8x768xf32>
    %c0_1 = arith.constant 0 : index
    %c0_2 = arith.constant 0 : index
    %1 = vector.load %arg5[%c0_1, %c0_2] : memref<768x128xbf16, #tpu.memory_space<vmem>>, vector<768x128xbf16>
    %2 = arith.truncf %0 : vector<8x768xf32> to vector<8x768xbf16>
    %cst = arith.constant dense<0.000000e+00> : vector<8x128xf32>
    %3 = tpu.matmul %2, %1, %cst {dimension_numbers = #tpu.dot_dimension_numbers<[1], [0], [0], [1], [0, 0, 1, 1], [], []>} : vector<8x768xbf16>, vector<768x128xbf16>, vector<8x128xf32> -> vector<8x128xf32>
    %c0_3 = arith.constant 0 : index
    %c0_4 = arith.constant 0 : index
    %4 = vector.load %arg6[%c0_3, %c0_4] : memref<1x128xf32, #tpu.memory_space<vmem>>, vector<1x128xf32>
    %5 = vector.broadcast %4 : vector<1x128xf32> to vector<8x128xf32>
    %6 = arith.addf %3, %5 : vector<8x128xf32>
    %c0_5 = arith.constant 0 : index
    %c0_6 = arith.constant 0 : index
    %7 = vector.load %arg8[%c0_5, %c0_6] : memref<128x128xbf16, #tpu.memory_space<vmem>>, vector<128x128xbf16>
    %8 = arith.truncf %6 : vector<8x128xf32> to vector<8x128xbf16>
    %cst_7 = arith.constant dense<0.000000e+00> : vector<8x128xf32>
    %9 = tpu.matmul %8, %7, %cst_7 {dimension_numbers = #tpu.dot_dimension_numbers<[1], [0], [0], [1], [0, 0, 1, 1], [], []>} : vector<8x128xbf16>, vector<128x128xbf16>, vector<8x128xf32> -> vector<8x128xf32>
    %c0_8 = arith.constant 0 : index
    %c0_9 = arith.constant 0 : index
    %10 = vector.load %arg9[%c0_8, %c0_9] : memref<1x128xf32, #tpu.memory_space<vmem>>, vector<1x128xf32>
    %11 = vector.broadcast %10 : vector<1x128xf32> to vector<8x128xf32>
    %12 = arith.addf %9, %11 : vector<8x128xf32>
    %cst_10 = arith.constant 5.000000e-01 : f32
    %13 = vector.broadcast %cst_10 : f32 to vector<8x128xf32>
    %14 = arith.mulf %13, %12 : vector<8x128xf32>
    %cst_11 = arith.constant 4.471500e-02 : f32
    %15 = vector.broadcast %cst_11 : f32 to vector<8x128xf32>
    %16 = arith.mulf %15, %12 : vector<8x128xf32>
    %17 = arith.mulf %16, %12 : vector<8x128xf32>
    %18 = arith.mulf %17, %12 : vector<8x128xf32>
    %19 = arith.addf %12, %18 : vector<8x128xf32>
    %cst_12 = arith.constant 0.797884583 : f32
    %20 = vector.broadcast %cst_12 : f32 to vector<8x128xf32>
    %21 = arith.mulf %20, %19 : vector<8x128xf32>
    %22 = math.tanh %21 : vector<8x128xf32>
    %cst_13 = arith.constant 1.000000e+00 : f32
    %23 = vector.broadcast %cst_13 : f32 to vector<8x128xf32>
    %24 = arith.addf %23, %22 : vector<8x128xf32>
    %25 = arith.mulf %14, %24 : vector<8x128xf32>
    %c0_14 = arith.constant 0 : index
    %c0_15 = arith.constant 0 : index
    %26 = vector.load %arg10[%c0_14, %c0_15] : memref<128x128xbf16, #tpu.memory_space<vmem>>, vector<128x128xbf16>
    %27 = arith.truncf %25 : vector<8x128xf32> to vector<8x128xbf16>
    %cst_16 = arith.constant dense<0.000000e+00> : vector<8x128xf32>
    %28 = tpu.matmul %27, %26, %cst_16 {dimension_numbers = #tpu.dot_dimension_numbers<[1], [0], [0], [1], [0, 0, 1, 1], [], []>} : vector<8x128xbf16>, vector<128x128xbf16>, vector<8x128xf32> -> vector<8x128xf32>
    %c0_17 = arith.constant 0 : index
    %c0_18 = arith.constant 0 : index
    %29 = vector.load %arg11[%c0_17, %c0_18] : memref<1x128xf32, #tpu.memory_space<vmem>>, vector<1x128xf32>
    %30 = vector.broadcast %29 : vector<1x128xf32> to vector<8x128xf32>
    %31 = arith.addf %28, %30 : vector<8x128xf32>
    %c0_19 = arith.constant 0 : index
    %c0_20 = arith.constant 0 : index
    %32 = vector.load %arg2[%c0_19, %c0_20] : memref<16x1xi32, #tpu.memory_space<vmem>>, vector<16x1xi32>
    %33 = tpu.iota {dimensions = array<i32: 1>} : vector<16x128xi32>
    %34 = vector.broadcast %32 : vector<16x1xi32> to vector<16x128xi32>
    %35 = arith.cmpi eq, %33, %34 : vector<16x128xi32>
    %36 = arith.extui %35 : vector<16x128xi1> to vector<16x128xi32>
    %37 = arith.sitofp %36 : vector<16x128xi32> to vector<16x128xf32>
    %38 = arith.truncf %37 : vector<16x128xf32> to vector<16x128xbf16>
    %c0_21 = arith.constant 0 : index
    %c0_22 = arith.constant 0 : index
    %39 = vector.load %arg7[%c0_21, %c0_22] : memref<128x128xbf16, #tpu.memory_space<vmem>>, vector<128x128xbf16>
    %cst_23 = arith.constant dense<0.000000e+00> : vector<16x128xf32>
    %40 = tpu.matmul %38, %39, %cst_23 {dimension_numbers = #tpu.dot_dimension_numbers<[1], [0], [0], [1], [0, 0, 1, 1], [], []>} : vector<16x128xbf16>, vector<128x128xbf16>, vector<16x128xf32> -> vector<16x128xf32>
    %c0_24 = arith.constant 0 : index
    %c0_25 = arith.constant 0 : index
    %41 = vector.load %arg3[%c0_24, %c0_25] : memref<16x1xf32, #tpu.memory_space<vmem>>, vector<16x1xf32>
    %42 = vector.broadcast %41 : vector<16x1xf32> to vector<16x128xf32>
    %43 = arith.mulf %40, %42 : vector<16x128xf32>
    %44 = tpu.concatenate %43, %31 in 0 : vector<16x128xf32>, vector<8x128xf32> -> vector<24x128xf32>
    %c0_26 = arith.constant 0 : index
    %c0_27 = arith.constant 0 : index
    %45 = vector.load %arg12[%c0_26, %c0_27] : memref<128x128xbf16, #tpu.memory_space<vmem>>, vector<128x128xbf16>
    %46 = arith.truncf %44 : vector<24x128xf32> to vector<24x128xbf16>
    %cst_28 = arith.constant dense<0.000000e+00> : vector<24x128xf32>
    %47 = tpu.matmul %46, %45, %cst_28 {dimension_numbers = #tpu.dot_dimension_numbers<[1], [0], [0], [1], [0, 0, 1, 1], [], []>} : vector<24x128xbf16>, vector<128x128xbf16>, vector<24x128xf32> -> vector<24x128xf32>
    %c0_29 = arith.constant 0 : index
    %c0_30 = arith.constant 0 : index
    %48 = vector.load %arg13[%c0_29, %c0_30] : memref<1x128xf32, #tpu.memory_space<vmem>>, vector<1x128xf32>
    %49 = vector.broadcast %48 : vector<1x128xf32> to vector<24x128xf32>
    %50 = arith.addf %47, %49 : vector<24x128xf32>
    %cst_31 = arith.constant 5.000000e-01 : f32
    %51 = vector.broadcast %cst_31 : f32 to vector<24x128xf32>
    %52 = arith.mulf %51, %50 : vector<24x128xf32>
    %cst_32 = arith.constant 4.471500e-02 : f32
    %53 = vector.broadcast %cst_32 : f32 to vector<24x128xf32>
    %54 = arith.mulf %53, %50 : vector<24x128xf32>
    %55 = arith.mulf %54, %50 : vector<24x128xf32>
    %56 = arith.mulf %55, %50 : vector<24x128xf32>
    %57 = arith.addf %50, %56 : vector<24x128xf32>
    %cst_33 = arith.constant 0.797884583 : f32
    %58 = vector.broadcast %cst_33 : f32 to vector<24x128xf32>
    %59 = arith.mulf %58, %57 : vector<24x128xf32>
    %60 = math.tanh %59 : vector<24x128xf32>
    %cst_34 = arith.constant 1.000000e+00 : f32
    %61 = vector.broadcast %cst_34 : f32 to vector<24x128xf32>
    %62 = arith.addf %61, %60 : vector<24x128xf32>
    %63 = arith.mulf %52, %62 : vector<24x128xf32>
    %64 = arith.addf %44, %63 : vector<24x128xf32>
    %c0_35 = arith.constant 0 : index
    %c0_36 = arith.constant 0 : index
    %65 = vector.load %arg14[%c0_35, %c0_36] : memref<128x128xbf16, #tpu.memory_space<vmem>>, vector<128x128xbf16>
    %66 = arith.truncf %64 : vector<24x128xf32> to vector<24x128xbf16>
    %cst_37 = arith.constant dense<0.000000e+00> : vector<24x128xf32>
    %67 = tpu.matmul %66, %65, %cst_37 {dimension_numbers = #tpu.dot_dimension_numbers<[1], [0], [0], [1], [0, 0, 1, 1], [], []>} : vector<24x128xbf16>, vector<128x128xbf16>, vector<24x128xf32> -> vector<24x128xf32>
    %c0_38 = arith.constant 0 : index
    %c0_39 = arith.constant 0 : index
    %68 = vector.load %arg15[%c0_38, %c0_39] : memref<1x128xf32, #tpu.memory_space<vmem>>, vector<1x128xf32>
    %69 = vector.broadcast %68 : vector<1x128xf32> to vector<24x128xf32>
    %70 = arith.addf %67, %69 : vector<24x128xf32>
    %cst_40 = arith.constant 5.000000e-01 : f32
    %71 = vector.broadcast %cst_40 : f32 to vector<24x128xf32>
    %72 = arith.mulf %71, %70 : vector<24x128xf32>
    %cst_41 = arith.constant 4.471500e-02 : f32
    %73 = vector.broadcast %cst_41 : f32 to vector<24x128xf32>
    %74 = arith.mulf %73, %70 : vector<24x128xf32>
    %75 = arith.mulf %74, %70 : vector<24x128xf32>
    %76 = arith.mulf %75, %70 : vector<24x128xf32>
    %77 = arith.addf %70, %76 : vector<24x128xf32>
    %cst_42 = arith.constant 0.797884583 : f32
    %78 = vector.broadcast %cst_42 : f32 to vector<24x128xf32>
    %79 = arith.mulf %78, %77 : vector<24x128xf32>
    %80 = math.tanh %79 : vector<24x128xf32>
    %cst_43 = arith.constant 1.000000e+00 : f32
    %81 = vector.broadcast %cst_43 : f32 to vector<24x128xf32>
    %82 = arith.addf %81, %80 : vector<24x128xf32>
    %83 = arith.mulf %72, %82 : vector<24x128xf32>
    %c0_44 = arith.constant 0 : index
    %c0_45 = arith.constant 0 : index
    %84 = vector.load %arg16[%c0_44, %c0_45] : memref<128x128xbf16, #tpu.memory_space<vmem>>, vector<128x128xbf16>
    %85 = arith.truncf %83 : vector<24x128xf32> to vector<24x128xbf16>
    %cst_46 = arith.constant dense<0.000000e+00> : vector<24x128xf32>
    %86 = tpu.matmul %85, %84, %cst_46 {dimension_numbers = #tpu.dot_dimension_numbers<[1], [0], [0], [1], [0, 0, 1, 1], [], []>} : vector<24x128xbf16>, vector<128x128xbf16>, vector<24x128xf32> -> vector<24x128xf32>
    %c0_47 = arith.constant 0 : index
    %c0_48 = arith.constant 0 : index
    %87 = vector.load %arg17[%c0_47, %c0_48] : memref<1x128xf32, #tpu.memory_space<vmem>>, vector<1x128xf32>
    %88 = vector.broadcast %87 : vector<1x128xf32> to vector<24x128xf32>
    %89 = arith.addf %86, %88 : vector<24x128xf32>
    %c0_49 = arith.constant 0 : index
    %c0_50 = arith.constant 0 : index
    %90 = vector.load %arg18[%c0_49, %c0_50] : memref<24x128xf32, #tpu.memory_space<vmem>>, vector<24x128xf32>
    tpu.vector_store %arg18[%c0_49, %c0_50], %89 {strides = array<i32>} : memref<24x128xf32, #tpu.memory_space<vmem>>, vector<24x128xf32>,
    %91 = vector.extract_strided_slice %89 {offsets = [0, 0], sizes = [16, 128], strides = [1, 1]} : vector<24x128xf32> to vector<16x128xf32>
    %c0_51 = arith.constant 0 : index
    %92 = memref.load %arg0[%c0_51] : memref<1xi32, #tpu.memory_space<smem>>
    %c0_i32 = arith.constant 0 : i32
    %93 = arith.cmpi ne, %92, %c0_i32 : i32
    %94 = arith.extui %93 : i1 to i32
    %c0_i32_52 = arith.constant 0 : i32
    %95 = arith.cmpi ne, %94, %c0_i32_52 : i32
    scf.if %95 {
      %c0_56 = arith.constant 0 : index
      %c0_57 = arith.constant 0 : index
      %100 = vector.load %arg4[%c0_56, %c0_57] : memref<16x1xi32, #tpu.memory_space<vmem>>, vector<16x1xi32>
      %c-100_i32 = arith.constant -100 : i32
      %101 = vector.broadcast %c-100_i32 : i32 to vector<16x1xi32>
      %102 = arith.cmpi ne, %100, %101 : vector<16x1xi32>
      %103 = arith.extui %102 : vector<16x1xi1> to vector<16x1xi32>
      %104 = arith.sitofp %103 : vector<16x1xi32> to vector<16x1xf32>
      %cst_58 = arith.constant dense<0xFF800000> : vector<16xf32>
      %105 = vector.multi_reduction <maximumf>, %91, %cst_58 [1] : vector<16x128xf32> to vector<16xf32>
      %106 = vector.shape_cast %105 : vector<16xf32> to vector<16x1xf32>
      %107 = vector.broadcast %106 : vector<16x1xf32> to vector<16x128xf32>
      %108 = arith.subf %91, %107 : vector<16x128xf32>
      %109 = math.exp %108 : vector<16x128xf32>
      %cst_59 = arith.constant dense<0.000000e+00> : vector<16xf32>
      %110 = vector.multi_reduction <add>, %109, %cst_59 [1] : vector<16x128xf32> to vector<16xf32>
      %111 = vector.shape_cast %110 : vector<16xf32> to vector<16x1xf32>
      %112 = math.log %111 : vector<16x1xf32>
      %113 = arith.addf %112, %106 : vector<16x1xf32>
      %114 = vector.broadcast %100 : vector<16x1xi32> to vector<16x128xi32>
      %115 = arith.cmpi eq, %33, %114 : vector<16x128xi32>
      %cst_60 = arith.constant 0.000000e+00 : f32
      %116 = vector.broadcast %cst_60 : f32 to vector<16x128xf32>
      %117 = arith.select %115, %91, %116 : vector<16x128xi1>, vector<16x128xf32>
      %cst_61 = arith.constant dense<0.000000e+00> : vector<16xf32>
      %118 = vector.multi_reduction <add>, %117, %cst_61 [1] : vector<16x128xf32> to vector<16xf32>
      %119 = vector.shape_cast %118 : vector<16xf32> to vector<16x1xf32>
      %120 = arith.subf %113, %119 : vector<16x1xf32>
      %121 = arith.mulf %104, %120 : vector<16x1xf32>
      %cst_62 = arith.constant dense<0.000000e+00> : vector<1xf32>
      %122 = vector.multi_reduction <add>, %104, %cst_62 [0] : vector<16x1xf32> to vector<1xf32>
      %123 = vector.shape_cast %122 : vector<1xf32> to vector<1x1xf32>
      %cst_63 = arith.constant dense<0.000000e+00> : vector<1xf32>
      %124 = vector.multi_reduction <add>, %121, %cst_63 [0] : vector<16x1xf32> to vector<1xf32>
      %125 = vector.shape_cast %124 : vector<1xf32> to vector<1x1xf32>
      %126 = arith.divf %125, %123 : vector<1x1xf32>
      %127 = vector.shape_cast %126 : vector<1x1xf32> to vector<1x1xf32>
      %128 = vector.broadcast %127 : vector<1x1xf32> to vector<8x128xf32>
      %c0_64 = arith.constant 0 : index
      %c0_65 = arith.constant 0 : index
      %129 = vector.load %arg19[%c0_64, %c0_65] : memref<8x128xf32, #tpu.memory_space<vmem>>, vector<8x128xf32>
      tpu.vector_store %arg19[%c0_64, %c0_65], %128 {strides = array<i32>} : memref<8x128xf32, #tpu.memory_space<vmem>>, vector<8x128xf32>,
    } else {
    }
    %c0_53 = arith.constant 0 : index
    %96 = memref.load %arg0[%c0_53] : memref<1xi32, #tpu.memory_space<smem>>
    %c0_i32_54 = arith.constant 0 : i32
    %97 = arith.cmpi eq, %96, %c0_i32_54 : i32
    %98 = arith.extui %97 : i1 to i32
    %c0_i32_55 = arith.constant 0 : i32
    %99 = arith.cmpi ne, %98, %c0_i32_55 : i32
    scf.if %99 {
      %cst_56 = arith.constant 0.000000e+00 : f32
      %100 = vector.broadcast %cst_56 : f32 to vector<8x128xf32>
      %c0_57 = arith.constant 0 : index
      %c0_58 = arith.constant 0 : index
      %101 = vector.load %arg19[%c0_57, %c0_58] : memref<8x128xf32, #tpu.memory_space<vmem>>, vector<8x128xf32>
      tpu.vector_store %arg19[%c0_57, %c0_58], %100 {strides = array<i32>} : memref<8x128xf32, #tpu.memory_space<vmem>>, vector<8x128xf32>,
    } else {
    }
    return
  }
}

</mosaic_0001>

<bundles_post_ra>
// kernel: tpu_custom_call.1
= control target key start
LH: loop header
LB: loop body
LE: loop exit
PB: predicated region body
PF: predicated region fallthrough
CT: control target
= control target key end

     0   :  { %s2663_s0 = inlined_call_operand.<no memory space> [shape: s32[1], index: 0, kind: input, shape index: {}]   ;;  %s2664_s1 = inlined_call_operand.hbm [shape: f32[8,768], index: 1, kind: input, shape index: {}]   ;;  %s2665_s2 = inlined_call_operand.vmem [shape: s32[16,1], index: 2, kind: input, shape index: {}]   ;;  %s2666_s3 = inlined_call_operand.vmem [shape: f32[16,1], index: 3, kind: input, shape index: {}]   ;;  %s2667_s4 = inlined_call_operand.vmem [shape: s32[16,1], index: 4, kind: input, shape index: {}]   ;;  %s2668_s5 = inlined_call_operand.hbm [shape: bf16[768,128], index: 5, kind: input, shape index: {}]   ;;  %s2669_s6 = inlined_call_operand.vmem [shape: f32[1,128], index: 6, kind: input, shape index: {}]   ;;  %s2670_s7 = inlined_call_operand.vmem [shape: bf16[128,128], index: 7, kind: input, shape index: {}]   ;;  %s2671_s8 = inlined_call_operand.hbm [shape: bf16[128,128], index: 8, kind: input, shape index: {}]   ;;  %s2672_s9 = inlined_call_operand.vmem [shape: f32[1,128], index: 9, kind: input, shape index: {}]   ;;  %s2673_s10 = inlined_call_operand.hbm [shape: bf16[128,128], index: 10, kind: input, shape index: {}]   ;;  %s2674_s11 = inlined_call_operand.vmem [shape: f32[1,128], index: 11, kind: input, shape index: {}]   ;;  %s2675_s12 = inlined_call_operand.hbm [shape: bf16[128,128], index: 12, kind: input, shape index: {}]   ;;  %s2676_s13 = inlined_call_operand.vmem [shape: f32[1,128], index: 13, kind: input, shape index: {}]   ;;  %s2677_s14 = inlined_call_operand.hbm [shape: bf16[128,128], index: 14, kind: input, shape index: {}]   ;;  %s2678_s15 = inlined_call_operand.vmem [shape: f32[1,128], index: 15, kind: input, shape index: {}]   ;;  %s2679_s16 = inlined_call_operand.hbm [shape: bf16[128,128], index: 16, kind: input, shape index: {}]   ;;  %s2680_s17 = inlined_call_operand.vmem [shape: f32[1,128], index: 17, kind: input, shape index: {}]   ;;  %s2681_s18 = inlined_call_operand.hbm [shape: f32[24,128], index: 18, kind: output, shape index: {0}]   ;;  %s2682_s19 = inlined_call_operand.hbm [shape: f32[8,128], index: 19, kind: output, shape index: {1}]  }
   0x1   :  { %2687 = sst [smem:[#allocation24_spill]] %s2663_s0 }
   0x2   :  { %2688 = sst [smem:[#allocation25_spill]] %s2664_s1  ;;  %s2692_s20 = sld [smem:[#allocation24_spill]] }
   0x3   :  { %2689 = sst [smem:[#allocation26_spill]] %s2665_s2 }
   0x4   :  { %2690 = sst [smem:[#allocation27_spill]] %s2666_s3 }
   0x5   :  { %2691 = sst [smem:[#allocation28_spill]] %s2682_s19 }
   0x8   :  { %25 = sst [smem:[#allocation2]] %s2692_s20 }
   0x9   :  { %26 = vsyncpa [#allocation4], 0 }
   0xa   :  { %27 = vsyncpa [#allocation7], 0 }
   0xb   :  { %28 = vsyncpa [#allocation10], 0 }
   0xc   :  { %29 = vsyncpa [#allocation13], 0 }
   0xd   :  { %30 = vsyncpa [#allocation5], 0 }
   0xe   :  { %31 = vsyncpa [#allocation17], 0  ;;  %s2298_s21 = smov [#allocation6]   ;;  %s2088_s23 = scalar_lea.hbm %s2668_s5, 6144 }
   0xf   :  { %s55_s1 = sshll.u32 %s2298_s21, 4  ;;  %p2089_p0 = scmp.ne.s32.totalorder %s2668_s5, %s2088_s23  ;;  %s56_s1 = int_to_ptr.vmem [resolvable:$true] %s55_s1 }
  0x10   :  { %p2092_p1 = scmp.lt.u32.totalorder %s2088_s23, %s2668_s5 }
  0x12   :  { %p2094_p2 = pnand %p2092_p1, %p2089_p0 }
  0x14   :  { %2097 = shalt.err (!%p2094_p2)
}
  0x15   :  { %s2098_s27 = scalar_lea.vmem %s56_s1, 6144  ;;  %p2103_p4 = scmp.lt.s32.totalorder %s56_s1, %s56_s1 }
  0x16   :  { %p2099_p3 = scmp.ne.s32.totalorder %s56_s1, %s2098_s27  ;;  %p2104_p5 = scmp.lt.s32.totalorder %s2098_s27, %s2098_s27 }
  0x18   :  { %p2105_p6 = por %p2104_p5, %p2103_p4 }
  0x1a   :  { %p2106_p7 = pnand %p2105_p6, %p2099_p3 }
  0x1c   :  { %2109 = shalt.err (!%p2106_p7)
}
  0x1d   :  { %s2299_s28 = smov 64   ;;  %s2300_s29 = smov 4  }
  0x1e   :  { %61 = dma.hbm_to_vmem [thread:$0]  %s2668_s5, 6144, %s56_s1, [#allocation7], %s2299_s28, %s2299_s28, %s2300_s29  }
  0x1f   :  { %s2301_s20 = smov [#allocation9]   ;;  %s2302_s22 = smov [#allocation12]  }
  0x20   :  { %s85_s21 = sshll.u32 %s2301_s20, 4  ;;  %s113_s2 = sshll.u32 %s2302_s22, 4  ;;  %s86_s21 = int_to_ptr.vmem [resolvable:$true] %s85_s21  ;;  %s114_s2 = int_to_ptr.vmem [resolvable:$true] %s113_s2 }
  0x21   :  { %s2110_s25 = scalar_lea.hbm %s2673_s10, 1024 }
  0x22   :  { %p2111_p8 = scmp.ne.s32.totalorder %s2673_s10, %s2110_s25  ;;  %p2114_p9 = scmp.lt.u32.totalorder %s2110_s25, %s2673_s10 }
  0x24   :  { %p2116_p10 = pnand %p2114_p9, %p2111_p8 }
  0x26   :  { %2119 = shalt.err (!%p2116_p10)
}
  0x27   :  { %s2120_s5 = scalar_lea.vmem %s86_s21, 1024  ;;  %p2125_p12 = scmp.lt.s32.totalorder %s86_s21, %s86_s21 }
  0x28   :  { %p2121_p11 = scmp.ne.s32.totalorder %s86_s21, %s2120_s5  ;;  %p2126_p13 = scmp.lt.s32.totalorder %s2120_s5, %s2120_s5 }
  0x2a   :  { %p2127_p0 = por %p2126_p13, %p2125_p12 }
  0x2c   :  { %p2128_p1 = pnand %p2127_p0, %p2121_p11 }
  0x2e   :  { %2131 = shalt.err (!%p2128_p1)
}
  0x2f   :  { %91 = dma.hbm_to_vmem [thread:$0]  %s2673_s10, 1024, %s86_s21, [#allocation10], %s2299_s28, %s2299_s28, %s2300_s29  }
  0x30   :  { %s2132_s20 = scalar_lea.hbm %s2677_s14, 1024 }
  0x31   :  { %p2133_p2 = scmp.ne.s32.totalorder %s2677_s14, %s2132_s20  ;;  %p2136_p3 = scmp.lt.u32.totalorder %s2132_s20, %s2677_s14 }
  0x33   :  { %p2138_p4 = pnand %p2136_p3, %p2133_p2 }
  0x35   :  { %2141 = shalt.err (!%p2138_p4)
}
  0x36   :  { %s2142_s3 = scalar_lea.vmem %s114_s2, 1024  ;;  %p2147_p6 = scmp.lt.s32.totalorder %s114_s2, %s114_s2 }
  0x37   :  { %p2143_p5 = scmp.ne.s32.totalorder %s114_s2, %s2142_s3  ;;  %p2148_p7 = scmp.lt.s32.totalorder %s2142_s3, %s2142_s3 }
  0x39   :  { %p2149_p8 = por %p2148_p7, %p2147_p6 }
  0x3b   :  { %p2150_p9 = pnand %p2149_p8, %p2143_p5 }
  0x3d   :  { %2153 = shalt.err (!%p2150_p9)
}
  0x3e   :  { %119 = dma.hbm_to_vmem [thread:$0]  %s2677_s14, 1024, %s114_s2, [#allocation13], %s2299_s28, %s2299_s28, %s2300_s29  }
  0x3f   :  { %s2303_s26 = smov [#allocation3]   ;;  %s2304_s5 = smov [#allocation8]  }
  0x40   :  { %s40_s27 = sshll.u32 %s2303_s26, 4  ;;  %s71_s1 = sshll.u32 %s2304_s5, 4  ;;  %s41_s27 = int_to_ptr.vmem [resolvable:$true] %s40_s27  ;;  %s72_s1 = int_to_ptr.vmem [resolvable:$true] %s71_s1 }
  0x41   :  { %s2693_s19 = sld [smem:[#allocation25_spill]] }
  0x47   :  { %s2154_s20 = scalar_lea.hbm %s2693_s19, 768 }
  0x48   :  { %p2155_p10 = scmp.ne.s32.totalorder %s2693_s19, %s2154_s20  ;;  %p2158_p11 = scmp.lt.u32.totalorder %s2154_s20, %s2693_s19 }
  0x4a   :  { %p2160_p12 = pnand %p2158_p11, %p2155_p10 }
  0x4c   :  { %2163 = shalt.err (!%p2160_p12)
}
  0x4d   :  { %s2164_s14 = scalar_lea.vmem %s41_s27, 768  ;;  %p2169_p0 = scmp.lt.s32.totalorder %s41_s27, %s41_s27 }
  0x4e   :  { %p2165_p13 = scmp.ne.s32.totalorder %s41_s27, %s2164_s14  ;;  %p2170_p1 = scmp.lt.s32.totalorder %s2164_s14, %s2164_s14 }
  0x50   :  { %p2171_p2 = por %p2170_p1, %p2169_p0 }
  0x52   :  { %p2172_p3 = pnand %p2171_p2, %p2165_p13 }
  0x54   :  { %2175 = shalt.err (!%p2172_p3)
}
  0x55   :  { %43 = dma.hbm_to_vmem [thread:$0]  %s2693_s19, 768, %s41_s27, [#allocation4]  }
  0x56   :  { %s2176_s26 = scalar_lea.hbm %s2671_s8, 1024 }
  0x57   :  { %p2177_p4 = scmp.ne.s32.totalorder %s2671_s8, %s2176_s26  ;;  %p2180_p5 = scmp.lt.u32.totalorder %s2176_s26, %s2671_s8 }
  0x59   :  { %p2182_p6 = pnand %p2180_p5, %p2177_p4 }
  0x5b   :  { %2185 = shalt.err (!%p2182_p6)
}
  0x5c   :  { %s2186_s22 = scalar_lea.vmem %s72_s1, 1024  ;;  %p2191_p8 = scmp.lt.s32.totalorder %s72_s1, %s72_s1 }
  0x5d   :  { %p2187_p7 = scmp.ne.s32.totalorder %s72_s1, %s2186_s22  ;;  %p2192_p9 = scmp.lt.s32.totalorder %s2186_s22, %s2186_s22 }
  0x5f   :  { %p2193_p10 = por %p2192_p9, %p2191_p8 }
  0x61   :  { %p2194_p11 = pnand %p2193_p10, %p2187_p7 }
  0x63   :  { %2197 = shalt.err (!%p2194_p11)
}
  0x64   :  { %77 = dma.hbm_to_vmem [thread:$0]  %s2671_s8, 1024, %s72_s1, [#allocation7], %s2299_s28, %s2299_s28, %s2300_s29  }
  0x65   :  { %s2305_s23 = smov [#allocation11]   ;;  %s2306_s25 = smov [#allocation14]  }
  0x66   :  { %s99_s24 = sshll.u32 %s2305_s23, 4  ;;  %s127_s14 = sshll.u32 %s2306_s25, 4  ;;  %s100_s24 = int_to_ptr.vmem [resolvable:$true] %s99_s24  ;;  %s128_s14 = int_to_ptr.vmem [resolvable:$true] %s127_s14 }
  0x67   :  { %s2198_s10 = scalar_lea.hbm %s2675_s12, 1024 }
  0x68   :  { %p2199_p12 = scmp.ne.s32.totalorder %s2675_s12, %s2198_s10  ;;  %p2202_p13 = scmp.lt.u32.totalorder %s2198_s10, %s2675_s12 }
  0x6a   :  { %p2204_p0 = pnand %p2202_p13, %p2199_p12 }
  0x6c   :  { %2207 = shalt.err (!%p2204_p0)
}
  0x6d   :  { %s2208_s8 = scalar_lea.vmem %s100_s24, 1024  ;;  %p2213_p2 = scmp.lt.s32.totalorder %s100_s24, %s100_s24 }
  0x6e   :  { %p2209_p1 = scmp.ne.s32.totalorder %s100_s24, %s2208_s8  ;;  %p2214_p3 = scmp.lt.s32.totalorder %s2208_s8, %s2208_s8 }
  0x70   :  { %p2215_p4 = por %p2214_p3, %p2213_p2 }
  0x72   :  { %p2216_p5 = pnand %p2215_p4, %p2209_p1 }
  0x74   :  { %2219 = shalt.err (!%p2216_p5)
}
  0x75   :  { %105 = dma.hbm_to_vmem [thread:$0]  %s2675_s12, 1024, %s100_s24, [#allocation10], %s2299_s28, %s2299_s28, %s2300_s29  }
  0x76   :  { %s2220_s27 = scalar_lea.hbm %s2679_s16, 1024 }
  0x77   :  { %p2221_p6 = scmp.ne.s32.totalorder %s2679_s16, %s2220_s27  ;;  %p2224_p7 = scmp.lt.u32.totalorder %s2220_s27, %s2679_s16 }
  0x79   :  { %p2226_p8 = pnand %p2224_p7, %p2221_p6 }
  0x7b   :  { %2229 = shalt.err (!%p2226_p8)
}
  0x7c   :  { %s2230_s3 = scalar_lea.vmem %s128_s14, 1024  ;;  %p2235_p10 = scmp.lt.s32.totalorder %s128_s14, %s128_s14 }
  0x7d   :  { %p2231_p9 = scmp.ne.s32.totalorder %s128_s14, %s2230_s3  ;;  %p2236_p11 = scmp.lt.s32.totalorder %s2230_s3, %s2230_s3 }
  0x7f   :  { %p2237_p12 = por %p2236_p11, %p2235_p10 }
  0x81   :  { %p2238_p13 = pnand %p2237_p12, %p2231_p9 }
  0x83   :  { %2241 = shalt.err (!%p2238_p13)
}
  0x84   :  { %133 = dma.hbm_to_vmem [thread:$0]  %s2679_s16, 1024, %s128_s14, [#allocation13], %s2299_s28, %s2299_s28, %s2300_s29  }
  0x85   :  { %2286 = dma.done.wait [#allocation4], 768  }
  0x86   :  { %2287 = vsyncadd [#allocation4], 4294966528 }
  0x87   :  { %2288 = dma.done.wait [#allocation7], 7168  }
  0x88   :  { %2289 = vsyncadd [#allocation7], 4294960128 }
  0x89   :  { %2290 = dma.done.wait [#allocation10], 2048  }
  0x8a   :  { %2291 = vsyncadd [#allocation10], 4294965248 }
  0x8b   :  { %2292 = dma.done.wait [#allocation13], 2048  }
  0x8c   :  { %2293 = vsyncadd [#allocation13], 4294965248  ;;  %s2523_s10 = sld [smem:[#allocation2]]  ;;  %v1966_v0 = vld [vmem:[#allocation6 + $0x40] sm:$0xff]   ;;  %v1970_v4 = vld [vmem:[#allocation6 + $0x48] sm:$0xff]   ;;  %v2307_v61 = vmov 0.0  }
  0x8d   :  { %v1967_v1 = vld [vmem:[#allocation6] sm:$0xff]   ;;  %1701 = vmatprep.subr.bf16.mxu0 %v1966_v0  ;;  %v1971_v5 = vld [vmem:[#allocation6 + $0x8] sm:$0xff]   ;;  %v1974_v8 = vld [vmem:[#allocation6 + $0x50] sm:$0xff]   ;;  %vm2308_vm0 = vmmov 0   ;;  %s2694_s29 = sld [smem:[#allocation26_spill]] }
  0x8e   :  { %v1968_v2 = vld [vmem:[#allocation6 + $0xc0] sm:$0xff]   ;;  %1702 = vmatpush3.bf16.msra.mxu0 %v1967_v1  ;;  %v1972_v6 = vld [vmem:[#allocation6 + $0xc8] sm:$0xff]   ;;  %v1975_v9 = vld [vmem:[#allocation6 + $0x10] sm:$0xff]  }
  0x8f   :  { %v1969_v3 = vld [vmem:[#allocation6 + $0x80] sm:$0xff]   ;;  %1723 = vmatprep.subr.bf16.mxu1 %v1968_v2  ;;  %1703 = vmatprep.subr.bf16.mxu0 %v1970_v4  ;;  %v1973_v7 = vld [vmem:[#allocation6 + $0x88] sm:$0xff]   ;;  %v1976_v10 = vld [vmem:[#allocation6 + $0xd0] sm:$0xff]  }
  0x90   :  { %1724 = vmatpush3.bf16.msra.mxu1 %v1969_v3  ;;  %v1977_v11 = vld [vmem:[#allocation6 + $0x90] sm:$0xff]   ;;  %v1978_v12 = vld [vmem:[#allocation6 + $0x58] sm:$0xff]   ;;  %v1982_v16 = vld [vmem:[#allocation6 + $0x60] sm:$0xff]  }
  0x91   :  { %1725 = vmatprep.subr.bf16.mxu1 %v1972_v6  ;;  %v1979_v13 = vld [vmem:[#allocation6 + $0x18] sm:$0xff]   ;;  %v1983_v17 = vld [vmem:[#allocation6 + $0x20] sm:$0xff]   ;;  %v1986_v20 = vld [vmem:[#allocation6 + $0x68] sm:$0xff]   ;;  %v2309_v6 = vmov 0  }
  0x92   :  { %1704 = vmatpush3.bf16.msra.mxu0 %v1971_v5  ;;  %v1980_v14 = vld [vmem:[#allocation6 + $0xd8] sm:$0xff]   ;;  %v1984_v18 = vld [vmem:[#allocation6 + $0xe0] sm:$0xff]   ;;  %v1987_v21 = vld [vmem:[#allocation6 + $0x28] sm:$0xff]   ;;  %1964 = vset.pattern.permute.xlu0 %v2309_v6  ;;  %p1697_p0 = scmp.eq.s32.totalorder %s2523_s10, 0 }
  0x93   :  { %1705 = vmatprep.subr.bf16.mxu0 %v1974_v8  ;;  %v1981_v15 = vld [vmem:[#allocation6 + $0x98] sm:$0xff]   ;;  %v1985_v19 = vld [vmem:[#allocation6 + $0xa0] sm:$0xff]   ;;  %v1988_v22 = vld [vmem:[#allocation6 + $0xe8] sm:$0xff]   ;;  %1965 = vset.pattern.permute.xlu1 %v2309_v6  ;;  %vm1524_vm7 = vcmask (!%p1697_p0), 7168  }
  0x94   :  { %1726 = vmatpush3.bf16.msra.mxu1 %v1973_v7  ;;  %v1989_v23 = vld [vmem:[#allocation6 + $0xa8] sm:$0xff]   ;;  %v1990_v24 = vld [vmem:[#allocation6 + $0x70] sm:$0xff]   ;;  %v1994_v28 = vld [vmem:[#allocation6 + $0x78] sm:$0xff]  }
  0x95   :  { %1727 = vmatprep.subr.bf16.mxu1 %v1976_v10  ;;  %v1991_v25 = vld [vmem:[#allocation6 + $0x30] sm:$0xff]   ;;  %v1995_v29 = vld [vmem:[#allocation6 + $0x38] sm:$0xff]   ;;  %v1998_v36 = vld [vmem:[#allocation6 + $0x140] sm:$0xff]  }
  0x96   :  { %1706 = vmatpush3.bf16.msra.mxu0 %v1975_v9  ;;  %v1992_v26 = vld [vmem:[#allocation6 + $0xf0] sm:$0xff]   ;;  %v1996_v30 = vld [vmem:[#allocation6 + $0xf8] sm:$0xff]   ;;  %v161_v37 = vld [vmem:[#allocation3 + $0x18] sm:$0xff] }
  0x97   :  { %1707 = vmatprep.subr.bf16.mxu0 %v1978_v12  ;;  %v1993_v27 = vld [vmem:[#allocation6 + $0xb0] sm:$0xff]   ;;  %v159_v31 = vld [vmem:[#allocation3 + $0x8] sm:$0xff]  ;;  %v263_v38 = vpack.c.bf16 %v161_v37, %v161_v37  ;;  %v1999_v39 = vld [vmem:[#allocation6 + $0x100] sm:$0xff]  }
  0x98   :  { %1728 = vmatpush3.bf16.msra.mxu1 %v1977_v11  ;;  %v261_v32 = vpack.c.bf16 %v159_v31, %v159_v31  ;;  %v1997_v33 = vld [vmem:[#allocation6 + $0xb8] sm:$0xff]   ;;  %v158_v34 = vld [vmem:[#allocation3] sm:$0xff]  ;;  %v160_v40 = vld [vmem:[#allocation3 + $0x10] sm:$0xff] }
  0x99   :  { %1729 = vmatprep.subr.bf16.mxu1 %v1980_v14  ;;  %v260_v35 = vpack.c.bf16 %v158_v34, %v158_v34  ;;  %633 = vmatprep.mubr.bf16.mxu1 %v263_v38  ;;  %v262_v41 = vpack.c.bf16 %v160_v40, %v160_v40  ;;  %v2000_v42 = vld [vmem:[#allocation6 + $0x148] sm:$0xff]   ;;  %v2002_v44 = vld [vmem:[#allocation6 + $0x150] sm:$0xff]   ;;  %v2004_v46 = vld [vmem:[#allocation6 + $0x158] sm:$0xff]   ;;  %v916_v38 = vlaneseq }
  0x9a   :  { %1708 = vmatpush3.bf16.msra.mxu0 %v1979_v13  ;;  %593 = vmatprep.mubr.bf16.mxu0 %v261_v32  ;;  %v2001_v43 = vld [vmem:[#allocation6 + $0x108] sm:$0xff]   ;;  %v2003_v45 = vld [vmem:[#allocation6 + $0x110] sm:$0xff]   ;;  %v2005_v47 = vld [vmem:[#allocation6 + $0x118] sm:$0xff]  }
  0x9b   :  { %1709 = vmatprep.subr.bf16.mxu0 %v1982_v16  ;;  %v2006_v48 = vld [vmem:[#allocation6 + $0x160] sm:$0xff]   ;;  %v2008_v50 = vld [vmem:[#allocation6 + $0x168] sm:$0xff]   ;;  %v163_v51 = vld [vmem:[#allocation3 + $0x28] sm:$0xff] }
  0x9c   :  { %1730 = vmatpush3.bf16.msra.mxu1 %v1981_v15  ;;  %v2007_v49 = vld [vmem:[#allocation6 + $0x120] sm:$0xff]   ;;  %v2009_v52 = vld [vmem:[#allocation6 + $0x128] sm:$0xff]   ;;  %v265_v53 = vpack.c.bf16 %v163_v51, %v163_v51  ;;  %v2010_v54 = vld [vmem:[#allocation6 + $0x170] sm:$0xff]  }
  0x9d   :  { %1731 = vmatprep.subr.bf16.mxu1 %v1984_v18  ;;  %v2011_v55 = vld [vmem:[#allocation6 + $0x130] sm:$0xff]   ;;  %v2012_v56 = vld [vmem:[#allocation6 + $0x178] sm:$0xff]   ;;  %v2014_v60 = vld [vmem:[#allocation8] sm:$0xff]  }
  0x9e   :  { %1710 = vmatpush3.bf16.msra.mxu0 %v1983_v17  ;;  %v2013_v57 = vld [vmem:[#allocation6 + $0x138] sm:$0xff]   ;;  %v162_v58 = vld [vmem:[#allocation3 + $0x20] sm:$0xff]  ;;  %v2015_v62 = vld [vmem:[#allocation8 + $0x8] sm:$0xff]  }
  0x9f   :  { %1711 = vmatprep.subr.bf16.mxu0 %v1986_v20  ;;  %v264_v59 = vpack.c.bf16 %v162_v58, %v162_v58  ;;  %v2016_v63 = vld [vmem:[#allocation8 + $0x10] sm:$0xff]   ;;  %v2017_v0 = vld [vmem:[#allocation8 + $0x18] sm:$0xff]   ;;  %v2018_v1 = vld [vmem:[#allocation8 + $0x20] sm:$0xff]  }
  0xa0   :  { %1732 = vmatpush3.bf16.msra.mxu1 %v1985_v19  ;;  %v2019_v2 = vld [vmem:[#allocation8 + $0x28] sm:$0xff]   ;;  %v2020_v3 = vld [vmem:[#allocation8 + $0x30] sm:$0xff]   ;;  %v2021_v4 = vld [vmem:[#allocation8 + $0x38] sm:$0xff]  }
  0xa1   :  { %1733 = vmatprep.subr.bf16.mxu1 %v1988_v22  ;;  %v914_v5 = vld [vmem:[%s2694_s29] sm:$0xff]  ;;  %v915_v7 = vld [vmem:[%s2694_s29 + $0x8] sm:$0xff]  ;;  %v2025_v8 = vld [vmem:[#allocation9] sm:$0xff]   ;;  %s2695_s29 = sld [smem:[#allocation27_spill]] }
  0xa2   :  { %1712 = vmatpush3.bf16.msra.mxu0 %v1987_v21  ;;  %919 = vperm.xlu0 %1964, %v914_v5   ;;  %v1591_v10 = vld [vmem:[%s2669_s6] ss:$0 sm:$0xff]  ;;  %v2024_v31 = vld [vmem:[%s2670_s7 + $0x10] sm:$0xff]   ;;  %v2026_v32 = vld [vmem:[%s2670_s7 + $0x18] sm:$0xff]  }
  0xa3   :  { %1713 = vmatprep.subr.bf16.mxu0 %v1990_v24  ;;  %v2028_v34 = vld [vmem:[%s2670_s7 + $0x20] sm:$0xff]   ;;  %v2031_v37 = vld [vmem:[#allocation9 + $0x18] sm:$0xff]   ;;  %v2032_v40 = vld [vmem:[%s2670_s7 + $0x30] sm:$0xff]  }
  0xa4   :  { %1734 = vmatpush3.bf16.msra.mxu1 %v1989_v23  ;;  %v2040_v5 = vld [vmem:[#allocation11 + $0x10] sm:$0xff]   ;;  %v2041_v6 = vld [vmem:[#allocation11 + $0x18] sm:$0xff]  }
  0xa5   :  { %1735 = vmatprep.subr.bf16.mxu1 %v1992_v26 }
  0xa6   :  { %1714 = vmatpush3.bf16.msra.mxu0 %v1991_v25  ;;  %922 = vperm.xlu0 %1964, %v915_v7   ;;  %v2042_v7 = vld [vmem:[#allocation11 + $0x20] sm:$0xff]  }
  0xa7   :  { %1715 = vmatprep.subr.bf16.mxu0 %v1994_v28  ;;  %v2022_v28 = vld [vmem:[%s2670_s7] sm:$0xff]   ;;  %v1037_v51 = vld [vmem:[%s2695_s29 + $0x8] sm:$0xff] }
  0xa8   :  { %1736 = vmatpush3.bf16.msra.mxu1 %v1993_v27 }
  0xa9   :  { %1737 = vmatprep.subr.bf16.mxu1 %v1996_v30  ;;  %v2023_v30 = vld [vmem:[%s2670_s7 + $0x8] sm:$0xff]  }
  0xaa   :  { %1716 = vmatpush3.bf16.msra.mxu0 %v1995_v29 }
  0xab   :  { %1745 = vmatprep.subr.bf16.mxu0 %v1998_v36  ;;  %v2030_v36 = vld [vmem:[%s2670_s7 + $0x28] sm:$0xff]  }
  0xac   :  { %1738 = vmatpush3.bf16.msra.mxu1 %v1997_v33  ;;  %v2027_v33 = vld [vmem:[#allocation9 + $0x8] sm:$0xff]  }
  0xad   :  { %594 = vmatmul.mubr.bf16.vlgmr.msra.gmra.mrb[0].mxu0 %v260_v35  ;;  %1824 = vmatprep.subr.bf16.mxu1 %v2307_v61  ;;  %v2029_v35 = vld [vmem:[#allocation9 + $0x10] sm:$0xff]  }
  0xae   :  { %1746 = vmatpush3.bf16.msra.mxu0 %v1999_v39  ;;  %673 = vmatprep.mubr.bf16.mxu0 %v265_v53 }
  0xaf   :  { %634 = vmatmul.mubr.bf16.vlgmr.msra.gmra.mrb[0].mxu1 %v262_v41  ;;  %1747 = vmatprep.subr.bf16.mxu0 %v2000_v42  ;;  %v2580_v41 = vand.u32 127, %v916_v38  ;;  %v2033_v42 = vld [vmem:[#allocation9 + $0x20] sm:$0xff]  }
  0xb0   :  { %1825 = vmatpush3.bf16.msra.mxu1 %v2014_v60  ;;  %1840 = vmatprep.mubr.msk.bf16.mxu1 %vm2308_vm0, %v2307_v61 }
  0xb1   :  { %1826 = vmatprep.subr.bf16.mxu1 %v2307_v61 }
  0xb2   :  { %1748 = vmatpush3.bf16.msra.mxu0 %v2001_v43 }
  0xb3   :  { %1749 = vmatprep.subr.bf16.mxu0 %v2002_v44  ;;  %v2034_v44 = vld [vmem:[%s2670_s7 + $0x38] sm:$0xff]  }
  0xb4   :  { %1827 = vmatpush3.bf16.msra.mxu1 %v2015_v62 }
  0xb5   :  { %1828 = vmatprep.subr.bf16.mxu1 %v2307_v61 }
  0xb6   :  { %1750 = vmatpush3.bf16.msra.mxu0 %v2003_v45  ;;  %v2035_v45 = vld [vmem:[#allocation9 + $0x28] sm:$0xff]  }
  0xb7   :  { %1751 = vmatprep.subr.bf16.mxu0 %v2004_v46  ;;  %v2036_v46 = vld [vmem:[#allocation9 + $0x30] sm:$0xff]  }
  0xb8   :  { %1829 = vmatpush3.bf16.msra.mxu1 %v2016_v63 }
  0xb9   :  { %1830 = vmatprep.subr.bf16.mxu1 %v2307_v61 }
  0xba   :  { %1752 = vmatpush3.bf16.msra.mxu0 %v2005_v47  ;;  %v2310_v47 = vmov 1.0|1.0  }
  0xbb   :  { %1753 = vmatprep.subr.bf16.mxu0 %v2006_v48  ;;  %v2037_v48 = vld [vmem:[#allocation9 + $0x38] sm:$0xff]  }
  0xbc   :  { %1831 = vmatpush3.bf16.msra.mxu1 %v2017_v0 }
  0xbd   :  { %1832 = vmatprep.subr.bf16.mxu1 %v2307_v61 }
  0xbe   :  { %1754 = vmatpush3.bf16.msra.mxu0 %v2007_v49  ;;  %v1036_v49 = vld [vmem:[%s2695_s29] sm:$0xff] }
  0xbf   :  { %1755 = vmatprep.subr.bf16.mxu0 %v2008_v50  ;;  %v2038_v50 = vld [vmem:[#allocation11] sm:$0xff]   ;;  %1040 = vperm.xlu1 %1965, %v1036_v49  }
  0xc0   :  { %1833 = vmatpush3.bf16.msra.mxu1 %v2018_v1 }
  0xc1   :  { %1834 = vmatprep.subr.bf16.mxu1 %v2307_v61 }
  0xc2   :  { %1756 = vmatpush3.bf16.msra.mxu0 %v2009_v52  ;;  %v1640_v52 = vld [vmem:[%s2672_s9] ss:$0 sm:$0xff] }
  0xc3   :  { %1757 = vmatprep.subr.bf16.mxu0 %v2010_v54  ;;  %1045 = vperm.xlu1 %1965, %v1037_v51  }
  0xc4   :  { %1835 = vmatpush3.bf16.msra.mxu1 %v2019_v2 }
  0xc5   :  { %1836 = vmatprep.subr.bf16.mxu1 %v2307_v61 }
  0xc6   :  { %1758 = vmatpush3.bf16.msra.mxu0 %v2011_v55 }
  0xc7   :  { %1759 = vmatprep.subr.bf16.mxu0 %v2012_v56 }
  0xc8   :  { %1837 = vmatpush3.bf16.msra.mxu1 %v2020_v3 }
  0xc9   :  { %1838 = vmatprep.subr.bf16.mxu1 %v2307_v61 }
  0xca   :  { %1760 = vmatpush3.bf16.msra.mxu0 %v2013_v57 }
  0xcb   :  { %1844 = vmatprep.subr.bf16.mxu0 %v2307_v61 }
  0xcc   :  { %1839 = vmatpush3.bf16.msra.mxu1 %v2021_v4  ;;  %v2039_v4 = vld [vmem:[#allocation11 + $0x8] sm:$0xff]  }
  0xcd   :  { %674 = vmatmul.mubr.bf16.vlgmr.msra.gmra.mrb[4].mxu0 %v264_v59  ;;  %1864 = vmatprep.subr.bf16.mxu1 %v2307_v61 }
  0xce   :  { %1860 = vmatprep.mubr.msk.bf16.mxu0 %vm2308_vm0, %v2307_v61  ;;  %1845 = vmatpush3.bf16.msra.mxu0 %v2025_v8  ;;  %v2043_v8 = vld [vmem:[#allocation11 + $0x28] sm:$0xff]  }
  0xcf   :  { %1846 = vmatprep.subr.bf16.mxu0 %v2307_v61 }
  0xd2   :  { %1847 = vmatpush3.bf16.msra.mxu0 %v2027_v33  ;;  %v2052_v33 = vld [vmem:[#allocation12 + $0x30] sm:$0xff]  }
  0xd3   :  { %1848 = vmatprep.subr.bf16.mxu0 %v2307_v61 }
  0xd6   :  { %1849 = vmatpush3.bf16.msra.mxu0 %v2029_v35  ;;  %v1670_v35 = vld [vmem:[%s2676_s13] ss:$0 sm:$0xff] }
  0xd7   :  { %1850 = vmatprep.subr.bf16.mxu0 %v2307_v61 }
  0xda   :  { %1851 = vmatpush3.bf16.msra.mxu0 %v2031_v37 }
  0xdb   :  { %1852 = vmatprep.subr.bf16.mxu0 %v2307_v61 }
  0xde   :  { %1853 = vmatpush3.bf16.msra.mxu0 %v2033_v42 }
  0xdf   :  { %1854 = vmatprep.subr.bf16.mxu0 %v2307_v61 }
  0xe2   :  { %1855 = vmatpush3.bf16.msra.mxu0 %v2035_v45 }
  0xe3   :  { %1856 = vmatprep.subr.bf16.mxu0 %v2307_v61 }
  0xe6   :  { %1857 = vmatpush3.bf16.msra.mxu0 %v2036_v46 }
  0xe7   :  { %1858 = vmatprep.subr.bf16.mxu0 %v2307_v61 }
  0xea   :  { %1859 = vmatpush3.bf16.msra.mxu0 %v2037_v48 }
  0xeb   :  { %1884 = vmatprep.subr.bf16.mxu0 %v2038_v50 }
 0x121   :  { %v920_v39 = vpop.permute.xlu0 %919 }
 0x122   :  { %vm924_vm1 = vcmp.eq.s32.totalorder %v2580_v41, %v920_v39 }
 0x125   :  { %v923_v43 = vpop.permute.xlu0 %922 }
 0x126   :  { %vm925_vm2 = vcmp.eq.s32.totalorder %v2580_v41, %v923_v43 }
 0x127   :  { %vm1668_vm3 = vmpackc.low %vm925_vm2, %vm924_vm1 }
 0x180   :  { %v1717_v9 = vpop.f32.mrb[0].mxu0 }
 0x181   :  { %v1718_v11 = vpop.f32.mrb[1].mxu0 }
 0x182   :  { %v1719_v12 = vadd.f32 %v1718_v11, %v1717_v9  ;;  %v1720_v13 = vpop.f32.mrb[2].mxu0  ;;  %v1739_v14 = vpop.f32.mrb[0].mxu1  ;;  %v2044_v9 = vld [vmem:[#allocation11 + $0x30] sm:$0xff]  }
 0x183   :  { %v1721_v15 = vpop.f32.mrb[3].mxu0  ;;  %v1740_v17 = vpop.f32.mrb[1].mxu1 }
 0x184   :  { %v596_v16 = vadd.f32 %v1719_v12, %v1591_v10  ;;  %v1741_v18 = vadd.f32 %v1740_v17, %v1739_v14  ;;  %v1742_v19 = vpop.f32.mrb[2].mxu1  ;;  %v1041_v10 = vpop.permute.xlu1 %1040 }
 0x185   :  { %v1743_v20 = vpop.f32.mrb[3].mxu1  ;;  %v2045_v19 = vld [vmem:[#allocation11 + $0x38] sm:$0xff]  }
 0x186   :  { %v636_v21 = vadd.f32 %v1741_v18, %v596_v16  ;;  %v1649_v20 = vld [vmem:[%s2674_s11] ss:$0 sm:$0xff] }
 0x188   :  { %v1046_v12 = vpop.permute.xlu1 %1045 }
 0x1a0   :  { %v1761_v22 = vpop.f32.mrb[4].mxu0 }
 0x1a1   :  { %v1762_v23 = vpop.f32.mrb[5].mxu0 }
 0x1a2   :  { %v1763_v24 = vadd.f32 %v1762_v23, %v1761_v22  ;;  %v1764_v25 = vpop.f32.mrb[6].mxu0 }
 0x1a3   :  { %v1765_v26 = vpop.f32.mrb[7].mxu0 }
 0x1a4   :  { %v676_v27 = vadd.f32 %v1763_v24, %v636_v21 }
 0x1a6   :  { %v697_v29 = vpack.c.bf16 %v676_v27, %v676_v27  ;;  %v2046_v27 = vld [vmem:[#allocation12] sm:$0xff]  }
 0x1a8   :  { %1841 = vmatmul.mubr.bf16.vlgmr.msra.gmra.mrb[4].mxu1 %v697_v29  ;;  %v2048_v29 = vld [vmem:[#allocation12 + $0x10] sm:$0xff]  }
 0x1a9   :  { %1865 = vmatpush3.bf16.msra.mxu1 %v2022_v28  ;;  %1880 = vmatprep.mubr.msk.bf16.mxu1 %vm2308_vm0, %v2307_v61  ;;  %v2047_v28 = vld [vmem:[#allocation12 + $0x8] sm:$0xff]  }
 0x1aa   :  { %1866 = vmatprep.subr.bf16.mxu1 %v2307_v61 }
 0x1ad   :  { %1867 = vmatpush3.bf16.msra.mxu1 %v2023_v30  ;;  %v2049_v30 = vld [vmem:[#allocation12 + $0x18] sm:$0xff]  }
 0x1ae   :  { %1868 = vmatprep.subr.bf16.mxu1 %v2307_v61 }
 0x1b1   :  { %1869 = vmatpush3.bf16.msra.mxu1 %v2024_v31  ;;  %v2050_v31 = vld [vmem:[#allocation12 + $0x20] sm:$0xff]  }
 0x1b2   :  { %1870 = vmatprep.subr.bf16.mxu1 %v2307_v61 }
 0x1b5   :  { %1871 = vmatpush3.bf16.msra.mxu1 %v2026_v32  ;;  %v2051_v32 = vld [vmem:[#allocation12 + $0x28] sm:$0xff]  }
 0x1b6   :  { %1872 = vmatprep.subr.bf16.mxu1 %v2307_v61 }
 0x1b9   :  { %1873 = vmatpush3.bf16.msra.mxu1 %v2028_v34  ;;  %v2053_v34 = vld [vmem:[#allocation12 + $0x38] sm:$0xff]  }
 0x1ba   :  { %1874 = vmatprep.subr.bf16.mxu1 %v2307_v61 }
 0x1bd   :  { %1875 = vmatpush3.bf16.msra.mxu1 %v2030_v36 }
 0x1be   :  { %1876 = vmatprep.subr.bf16.mxu1 %v2307_v61 }
 0x1c1   :  { %1877 = vmatpush3.bf16.msra.mxu1 %v2032_v40 }
 0x1c2   :  { %1878 = vmatprep.subr.bf16.mxu1 %v2307_v61 }
 0x1c5   :  { %1879 = vmatpush3.bf16.msra.mxu1 %v2034_v44 }
 0x1c6   :  { %1904 = vmatprep.subr.bf16.mxu1 %v2046_v27 }
 0x1c8   :  { %1881 = vmatmul.mubr.msk.bf16.vlgmr.msra.gmra.mrb[8].mxu1 %vm1668_vm3, %v2310_v47 }
 0x1c9   :  { %1905 = vmatpush3.bf16.msra.mxu1 %v2046_v27 }
 0x1ca   :  { %1906 = vmatprep.subr.bf16.mxu1 %v2047_v28 }
 0x1cd   :  { %1907 = vmatpush3.bf16.msra.mxu1 %v2047_v28 }
 0x1ce   :  { %1908 = vmatprep.subr.bf16.mxu1 %v2048_v29 }
 0x1d1   :  { %1909 = vmatpush3.bf16.msra.mxu1 %v2048_v29 }
 0x1d2   :  { %1910 = vmatprep.subr.bf16.mxu1 %v2049_v30 }
 0x1d5   :  { %1911 = vmatpush3.bf16.msra.mxu1 %v2049_v30 }
 0x1d6   :  { %1912 = vmatprep.subr.bf16.mxu1 %v2050_v31 }
 0x1d9   :  { %1913 = vmatpush3.bf16.msra.mxu1 %v2050_v31 }
 0x1da   :  { %1914 = vmatprep.subr.bf16.mxu1 %v2051_v32 }
 0x1dd   :  { %1915 = vmatpush3.bf16.msra.mxu1 %v2051_v32 }
 0x1de   :  { %1916 = vmatprep.subr.bf16.mxu1 %v2052_v33 }
 0x1e1   :  { %1917 = vmatpush3.bf16.msra.mxu1 %v2052_v33 }
 0x1e2   :  { %1918 = vmatprep.subr.bf16.mxu1 %v2053_v34 }
 0x1e5   :  { %1919 = vmatpush3.bf16.msra.mxu1 %v2053_v34 }
 0x27b   :  { %v787_v53 = vpop.f32.mrb[4].mxu1 }
 0x27c   :  { %v788_v54 = vadd.f32 %v1640_v52, %v787_v53  ;;  %v1842_v55 = vpop.f32.mrb[5].mxu1 }
 0x27d   :  { %v790_v56 = vpop.f32.mrb[6].mxu1 }
 0x27e   :  { %v794_v57 = vmul.f32 0.044715, %v788_v54  ;;  %v1843_v58 = vpop.f32.mrb[7].mxu1  ;;  %v793_v0 = vmul.f32 0.5, %v788_v54 }
 0x280   :  { %v795_v59 = vmul.f32 %v794_v57, %v788_v54 }
 0x282   :  { %v796_v60 = vmul.f32 %v795_v59, %v788_v54 }
 0x284   :  { %v797_v61 = vadd.f32 %v796_v60, %v788_v54 }
 0x286   :  { %v798_v62 = vmul.f32 0.7978846, %v797_v61 }
 0x288   :  { %2062 = vtanh.f32 %v798_v62 }
 0x292   :  { %v2063_v63 = vpop.eup %2062 }
 0x293   :  { %v800_v1 = vadd.f32 1.0, %v2063_v63 }
 0x295   :  { %v801_v2 = vmul.f32 %v800_v1, %v793_v0 }
 0x297   :  { %v818_v3 = vpack.c.bf16 %v801_v2, %v801_v2 }
 0x299   :  { %1861 = vmatmul.mubr.bf16.vlgmr.msra.gmra.mrb[8].mxu0 %v818_v3 }
 0x29a   :  { %1885 = vmatpush3.bf16.msra.mxu0 %v2038_v50 }
 0x29b   :  { %1886 = vmatprep.subr.bf16.mxu0 %v2039_v4  ;;  %v1029_v11 = vpop.f32.mrb[8].mxu1 }
 0x29c   :  { %v2601_v13 = vmul.f32 %v1041_v10, %v1029_v11  ;;  %v1882_v14 = vpop.f32.mrb[9].mxu1 }
 0x29d   :  { %v1032_v15 = vpop.f32.mrb[10].mxu1  ;;  %v2055_v14 = vld [vmem:[#allocation14 + $0x8] sm:$0xff]  }
 0x29e   :  { %1887 = vmatpush3.bf16.msra.mxu0 %v2039_v4  ;;  %v2603_v16 = vmul.f32 %v1046_v12, %v1032_v15  ;;  %v1883_v17 = vpop.f32.mrb[11].mxu1  ;;  %v2054_v12 = vld [vmem:[#allocation14] sm:$0xff]   ;;  %v2056_v15 = vld [vmem:[#allocation14 + $0x10] sm:$0xff]  }
 0x29f   :  { %1888 = vmatprep.subr.bf16.mxu0 %v2040_v5  ;;  %v2057_v17 = vld [vmem:[#allocation14 + $0x18] sm:$0xff]  }
 0x2a0   :  { %v1066_v18 = vpack.c.bf16 %v2603_v16, %v2601_v13 }
 0x2a2   :  { %1889 = vmatpush3.bf16.msra.mxu0 %v2040_v5  ;;  %1900 = vmatprep.mubr.bf16.mxu0 %v1066_v18  ;;  %v2058_v18 = vld [vmem:[#allocation14 + $0x20] sm:$0xff]  }
 0x2a3   :  { %1890 = vmatprep.subr.bf16.mxu0 %v2041_v6 }
 0x2a6   :  { %1891 = vmatpush3.bf16.msra.mxu0 %v2041_v6 }
 0x2a7   :  { %1892 = vmatprep.subr.bf16.mxu0 %v2042_v7 }
 0x2aa   :  { %1893 = vmatpush3.bf16.msra.mxu0 %v2042_v7 }
 0x2ab   :  { %1894 = vmatprep.subr.bf16.mxu0 %v2043_v8 }
 0x2ae   :  { %1895 = vmatpush3.bf16.msra.mxu0 %v2043_v8 }
 0x2af   :  { %1896 = vmatprep.subr.bf16.mxu0 %v2044_v9 }
 0x2b2   :  { %1897 = vmatpush3.bf16.msra.mxu0 %v2044_v9 }
 0x2b3   :  { %1898 = vmatprep.subr.bf16.mxu0 %v2045_v19 }
 0x2b6   :  { %1899 = vmatpush3.bf16.msra.mxu0 %v2045_v19  ;;  %v2061_v19 = vld [vmem:[#allocation14 + $0x38] sm:$0xff]  }
 0x2b7   :  { %1924 = vmatprep.subr.bf16.mxu0 %v2054_v12 }
 0x36c   :  { %v908_v21 = vpop.f32.mrb[8].mxu0 }
 0x36d   :  { %v2610_v22 = vadd.f32 %v1649_v20, %v908_v21  ;;  %v1862_v23 = vpop.f32.mrb[9].mxu0  ;;  %v1679_v20 = vld [vmem:[%s2678_s15] ss:$0 sm:$0xff] }
 0x36e   :  { %v911_v24 = vpop.f32.mrb[10].mxu0 }
 0x36f   :  { %v1067_v25 = vpack.c.bf16 %v2610_v22, %v2610_v22  ;;  %v1863_v26 = vpop.f32.mrb[11].mxu0 }
 0x371   :  { %1901 = vmatmul.mubr.bf16.vlgmr.msra.gmra.mrb[12].mxu0 %v1067_v25 }
 0x372   :  { %1925 = vmatpush3.bf16.msra.mxu0 %v2054_v12 }
 0x373   :  { %1926 = vmatprep.subr.bf16.mxu0 %v2055_v14 }
 0x376   :  { %1927 = vmatpush3.bf16.msra.mxu0 %v2055_v14 }
 0x377   :  { %1928 = vmatprep.subr.bf16.mxu0 %v2056_v15 }
 0x37a   :  { %1929 = vmatpush3.bf16.msra.mxu0 %v2056_v15 }
 0x37b   :  { %1930 = vmatprep.subr.bf16.mxu0 %v2057_v17 }
 0x37e   :  { %1931 = vmatpush3.bf16.msra.mxu0 %v2057_v17 }
 0x37f   :  { %1932 = vmatprep.subr.bf16.mxu0 %v2058_v18 }
 0x382   :  { %1933 = vmatpush3.bf16.msra.mxu0 %v2058_v18 }
 0x444   :  { %v1902_v36 = vpop.f32.mrb[12].mxu0 }
 0x445   :  { %v1166_v37 = vadd.f32 %v1902_v36, %v1670_v35  ;;  %v1157_v38 = vpop.f32.mrb[13].mxu0 }
 0x446   :  { %v1158_v39 = vadd.f32 %v1670_v35, %v1157_v38  ;;  %v1903_v40 = vpop.f32.mrb[14].mxu0 }
 0x447   :  { %v1176_v42 = vmul.f32 0.044715, %v1166_v37  ;;  %v1160_v43 = vpop.f32.mrb[15].mxu0  ;;  %v1173_v61 = vmul.f32 0.5, %v1166_v37 }
 0x448   :  { %v1174_v44 = vmul.f32 0.044715, %v1158_v39  ;;  %v1161_v45 = vadd.f32 %v1670_v35, %v1160_v43  ;;  %v1171_v63 = vmul.f32 0.5, %v1158_v39 }
 0x449   :  { %v1179_v46 = vmul.f32 %v1176_v42, %v1166_v37 }
 0x44a   :  { %v1177_v47 = vmul.f32 %v1174_v44, %v1158_v39  ;;  %v1175_v48 = vmul.f32 0.044715, %v1161_v45  ;;  %v1172_v3 = vmul.f32 0.5, %v1161_v45 }
 0x44b   :  { %v1182_v49 = vmul.f32 %v1179_v46, %v1166_v37 }
 0x44c   :  { %v1180_v50 = vmul.f32 %v1177_v47, %v1158_v39  ;;  %v1178_v51 = vmul.f32 %v1175_v48, %v1161_v45 }
 0x44d   :  { %v1185_v52 = vadd.f32 %v1182_v49, %v1166_v37 }
 0x44e   :  { %v1183_v53 = vadd.f32 %v1180_v50, %v1158_v39  ;;  %v1181_v54 = vmul.f32 %v1178_v51, %v1161_v45 }
 0x44f   :  { %v1188_v55 = vmul.f32 0.7978846, %v1185_v52 }
 0x450   :  { %v1184_v56 = vadd.f32 %v1181_v54, %v1161_v45  ;;  %v1186_v57 = vmul.f32 0.7978846, %v1183_v53 }
 0x451   :  { %2064 = vtanh.f32 %v1188_v55 }
 0x452   :  { %v1187_v58 = vmul.f32 0.7978846, %v1184_v56  ;;  %2066 = vtanh.f32 %v1186_v57 }
 0x454   :  { %2068 = vtanh.f32 %v1187_v58  ;;  %v1688_v58 = vld [vmem:[%s2680_s17] ss:$0 sm:$0xff] }
 0x45b   :  { %v2065_v59 = vpop.eup %2064 }
 0x45c   :  { %v2067_v60 = vpop.eup %2066  ;;  %v1194_v62 = vadd.f32 1.0, %v2065_v59 }
 0x45d   :  { %v1192_v0 = vadd.f32 1.0, %v2067_v60 }
 0x45e   :  { %v2069_v1 = vpop.eup %2068  ;;  %v1197_v2 = vmul.f32 %v1194_v62, %v1173_v61 }
 0x45f   :  { %v1193_v4 = vadd.f32 1.0, %v2069_v1  ;;  %v1195_v5 = vmul.f32 %v1192_v0, %v1171_v63 }
 0x460   :  { %v1200_v7 = vadd.f32 %v1197_v2, %v2610_v22  ;;  %v1478_v2 = vld [vmem:[%s2667_s4] sm:$0xff] (!%p1697_p0) }
 0x461   :  { %v1196_v6 = vmul.f32 %v1193_v4, %v1172_v3  ;;  %v1198_v8 = vadd.f32 %v1195_v5, %v2601_v13  ;;  %v2059_v13 = vld [vmem:[#allocation14 + $0x28] sm:$0xff]   ;;  %v2311_v3 = vmov (!%p1697_p0), 0   ;;  %v1479_v4 = vld [vmem:[%s2667_s4 + $0x8] sm:$0xff] (!%p1697_p0)  ;;  %vm1480_vm6 = vcmp.ne.s32.totalorder (!%p1697_p0), %v1478_v2, 4294967196 }
 0x462   :  { %v1218_v11 = vpack.c.bf16 %v1200_v7, %v1200_v7  ;;  %1934 = vmatprep.subr.bf16.mxu0 %v2059_v13  ;;  %2076 = vset.pattern.permute.xlu1 (!%p1697_p0), %v2311_v3  ;;  %vm1481_vm8 = vcmp.ne.s32.totalorder (!%p1697_p0), %v1479_v4, 4294967196 }
 0x463   :  { %v1199_v9 = vadd.f32 %v1196_v6, %v2603_v16  ;;  %v2060_v16 = vld [vmem:[#allocation14 + $0x30] sm:$0xff]   ;;  %1935 = vmatpush3.bf16.msra.mxu0 %v2059_v13  ;;  %2077 = vset.pattern.permute.xlu0 (!%p1697_p0), %v2311_v3  ;;  %v2312_v13 = vmov (!%p1697_p0), 0.0  }
 0x464   :  { %1936 = vmatprep.subr.bf16.mxu0 %v2060_v16  ;;  %1507 = vperm.xlu1 (!%p1697_p0), %2076, %v1478_v2  }
 0x465   :  { %v1217_v10 = vpack.c.bf16 %v1199_v9, %v1198_v8 }
 0x467   :  { %1920 = vmatprep.mubr.bf16.mxu1 %v1217_v10  ;;  %1937 = vmatpush3.bf16.msra.mxu0 %v2060_v16  ;;  %v1698_v16 = vsel (!%p1697_p0), %vm1480_vm6, 1.0, %v2312_v13 }
 0x468   :  { %1921 = vmatmul.mubr.bf16.vlgmr.msra.gmra.mrb[12].mxu1 %v1218_v11  ;;  %1938 = vmatprep.subr.bf16.mxu0 %v2061_v19 }
 0x469   :  { %1510 = vperm.xlu1 (!%p1697_p0), %2076, %v1479_v4  }
 0x46b   :  { %1939 = vmatpush3.bf16.msra.mxu0 %v2061_v19  ;;  %v1525_v19 = vsel (!%p1697_p0), %vm1524_vm7, %v1698_v16, 0.0 }
 0x4e3   :  { %v1508_v11 = vpop.permute.xlu1 (!%p1697_p0), %1507 }
 0x4e4   :  { %vm1512_vm4 = vcmp.eq.s32.totalorder (!%p1697_p0), %v2580_v41, %v1508_v11 }
 0x4e8   :  { %v1511_v14 = vpop.permute.xlu1 (!%p1697_p0), %1510 }
 0x4e9   :  { %vm1513_vm5 = vcmp.eq.s32.totalorder (!%p1697_p0), %v2580_v41, %v1511_v14 }
 0x53b   :  { %v1922_v21 = vpop.f32.mrb[12].mxu1 }
 0x53c   :  { %v1317_v22 = vadd.f32 %v1922_v21, %v1679_v20  ;;  %v1308_v23 = vpop.f32.mrb[13].mxu1 }
 0x53d   :  { %v1309_v24 = vadd.f32 %v1679_v20, %v1308_v23  ;;  %v1923_v25 = vpop.f32.mrb[14].mxu1 }
 0x53e   :  { %v1327_v26 = vmul.f32 0.044715, %v1317_v22  ;;  %v1311_v27 = vpop.f32.mrb[15].mxu1  ;;  %v1324_v49 = vmul.f32 0.5, %v1317_v22 }
 0x53f   :  { %v1325_v28 = vmul.f32 0.044715, %v1309_v24  ;;  %v1312_v29 = vadd.f32 %v1679_v20, %v1311_v27  ;;  %v1322_v50 = vmul.f32 0.5, %v1309_v24  ;;  %v1699_v20 = vsel (!%p1697_p0), %vm1481_vm8, 1.0, %v2312_v13 }
 0x540   :  { %v1330_v30 = vmul.f32 %v1327_v26, %v1317_v22  ;;  %v1526_v21 = vsel (!%p1697_p0), %vm1524_vm7, %v1699_v20, 0.0 }
 0x541   :  { %v1328_v31 = vmul.f32 %v1325_v28, %v1309_v24  ;;  %v1326_v32 = vmul.f32 0.044715, %v1312_v29  ;;  %v1323_v51 = vmul.f32 0.5, %v1312_v29 }
 0x542   :  { %v1333_v33 = vmul.f32 %v1330_v30, %v1317_v22 }
 0x543   :  { %v1331_v34 = vmul.f32 %v1328_v31, %v1309_v24  ;;  %v1329_v35 = vmul.f32 %v1326_v32, %v1312_v29 }
 0x544   :  { %v1336_v36 = vadd.f32 %v1333_v33, %v1317_v22  ;;  %v1527_v22 = vadd.f32 (!%p1697_p0), %v1526_v21, %v1525_v19 }
 0x545   :  { %v1332_v37 = vmul.f32 %v1329_v35, %v1312_v29  ;;  %v1334_v38 = vadd.f32 %v1331_v34, %v1309_v24 }
 0x546   :  { %v1339_v39 = vmul.f32 0.7978846, %v1336_v36  ;;  %v1528_v24 = vrot.slane (!%p1697_p0), %v1527_v22, 4 }
 0x547   :  { %v1335_v40 = vadd.f32 %v1332_v37, %v1312_v29  ;;  %v1337_v42 = vmul.f32 0.7978846, %v1334_v38 }
 0x548   :  { %2070 = vtanh.f32 %v1339_v39  ;;  %v1529_v25 = vadd.f32 (!%p1697_p0), %v1528_v24, %v1527_v22 }
 0x549   :  { %v1338_v43 = vmul.f32 0.7978846, %v1335_v40  ;;  %2072 = vtanh.f32 %v1337_v42 }
 0x54a   :  { %v1530_v26 = vrot.slane (!%p1697_p0), %v1529_v25, 2 }
 0x54b   :  { %2074 = vtanh.f32 %v1338_v43 }
 0x54c   :  { %v1531_v31 = vadd.f32 (!%p1697_p0), %v1530_v26, %v1529_v25 }
 0x54e   :  { %v1532_v36 = vrot.slane (!%p1697_p0), %v1531_v31, 1 }
 0x550   :  { %v1533_v42 = vadd.f32 (!%p1697_p0), %v1532_v36, %v1531_v31 }
 0x552   :  { %v2071_v44 = vpop.eup %2070 }
 0x553   :  { %v2073_v45 = vpop.eup %2072  ;;  %v1345_v46 = vadd.f32 1.0, %v2071_v44 }
 0x554   :  { %v1343_v47 = vadd.f32 1.0, %v2073_v45 }
 0x555   :  { %v2075_v48 = vpop.eup %2074  ;;  %v1348_v53 = vmul.f32 %v1345_v46, %v1324_v49 }
 0x556   :  { %v1344_v52 = vadd.f32 1.0, %v2075_v48  ;;  %v1346_v54 = vmul.f32 %v1343_v47, %v1322_v50 }
 0x557   :  { %v1366_v57 = vpack.c.bf16 %v1348_v53, %v1348_v53 }
 0x558   :  { %v1347_v55 = vmul.f32 %v1344_v52, %v1323_v51 }
 0x55a   :  { %v1365_v56 = vpack.c.bf16 %v1347_v55, %v1346_v54 }
 0x55c   :  { %1940 = vmatprep.mubr.bf16.mxu0 %v1365_v56 }
 0x55d   :  { %1941 = vmatmul.mubr.bf16.vlgmr.msra.gmra.mrb[16].mxu0 %v1366_v57 }
 0x630   :  { %v1942_v59 = vpop.f32.mrb[16].mxu0  ;;  %1477 = sbr.rel (%p1697_p0) target bundleno = 2056 (0x808), region = 105 }
 0x631   :  { %v1465_v60 = vadd.f32 %v1942_v59, %v1688_v58  ;;  %v1456_v61 = vpop.f32.mrb[17].mxu0 }
 0x632   :  { %v1457_v62 = vadd.f32 %v1688_v58, %v1456_v61  ;;  %v1943_v63 = vpop.f32.mrb[18].mxu0 }
 0x633   :  { %1472 = vst [vmem:[#allocation15 + $0x10] sm:$0xff] %v1465_v60  ;;  %v1459_v0 = vpop.f32.mrb[19].mxu0 }
 0x634   :  { %1470 = vst [vmem:[#allocation15] sm:$0xff] %v1457_v62  ;;  %v1460_v1 = vadd.f32 %v1688_v58, %v1459_v0  ;;  %1486 = vmax.xlane.f32.xlu0 (!%p1697_p0), %v1457_v62  ;;  %v1514_v15 = vsel (!%p1697_p0), %vm1512_vm4, %v1457_v62, 0.0 }
 0x636   :  { %1471 = vst [vmem:[#allocation15 + $0x8] sm:$0xff] %v1460_v1  ;;  %v1515_v18 = vsel (!%p1697_p0), %vm1513_vm5, %v1460_v1, 0.0 }
 0x638   :  { %1488 = vmax.xlane.f32.xlu0 %v1460_v1 }
 0x6c1   :  { %v1487_v5 = vpop.xlane.xlu0 %1486 }
 0x6c2   :  { %v1490_v6 = vsub.f32 %v1457_v62, %v1487_v5 }
 0x6c4   :  { %v1492_v7 = vmul.f32 1.442695, %v1490_v6 }
 0x6c5   :  { %v1489_v8 = vpop.xlane.xlu0 %1488 }
 0x6c6   :  { %2078 = vpow2.f32 %v1492_v7  ;;  %v1491_v9 = vsub.f32 %v1460_v1, %v1489_v8 }
 0x6c8   :  { %v1494_v10 = vmul.f32 1.442695, %v1491_v9 }
 0x6ca   :  { %2080 = vpow2.f32 %v1494_v10 }
 0x6d0   :  { %v2079_v12 = vpop.eup %2078 }
 0x6d1   :  { %1496 = vadd.xlane.f32.xlu0 %v2079_v12 }
 0x6d4   :  { %v2081_v17 = vpop.eup %2080 }
 0x6d5   :  { %1498 = vadd.xlane.f32.xlu1 %v2081_v17  ;;  %1516 = vadd.xlane.f32.xlu0 %v1514_v15 }
 0x6d9   :  { %1518 = vadd.xlane.f32.xlu0 %v1515_v18 }
 0x75e   :  { %v1497_v23 = vpop.xlane.xlu0 %1496 }
 0x75f   :  { %2082 = vlog2.f32 %v1497_v23 }
 0x762   :  { %v1499_v41 = vpop.xlane.xlu1 %1498  ;;  %v1517_v29 = vpop.xlane.xlu0 %1516 }
 0x763   :  { %2084 = vlog2.f32 %v1499_v41 }
 0x764   :  { %2086 = vrcp.f32 %v1533_v42 }
 0x766   :  { %v1519_v37 = vpop.xlane.xlu0 %1518 }
 0x769   :  { %v2083_v27 = vpop.eup %2082 }
 0x76a   :  { %v1501_v28 = vmul.f32 0.6931472, %v2083_v27 }
 0x76c   :  { %v1504_v30 = vadd.f32 %v1501_v28, %v1487_v5 }
 0x76d   :  { %v2085_v32 = vpop.eup %2084 }
 0x76e   :  { %v1503_v33 = vmul.f32 0.6931472, %v2085_v32  ;;  %v1520_v34 = vsub.f32 %v1504_v30, %v1517_v29  ;;  %v2087_v51 = vpop.eup %2086 }
 0x770   :  { %v1505_v35 = vadd.f32 %v1503_v33, %v1489_v8  ;;  %v1522_v38 = vmul.f32 %v1698_v16, %v1520_v34 }
 0x772   :  { %v1521_v39 = vsub.f32 %v1505_v35, %v1519_v37  ;;  %v1534_v43 = vsel %vm1524_vm7, %v1522_v38, 0.0 }
 0x774   :  { %v1523_v40 = vmul.f32 %v1699_v20, %v1521_v39 }
 0x776   :  { %v1535_v44 = vsel %vm1524_vm7, %v1523_v40, 0.0 }
 0x777   :  { %v1536_v45 = vadd.f32 %v1535_v44, %v1534_v43 }
 0x779   :  { %v1537_v46 = vrot.slane %v1536_v45, 4 }
 0x77b   :  { %v1538_v47 = vadd.f32 %v1537_v46, %v1536_v45 }
 0x77d   :  { %v1539_v48 = vrot.slane %v1538_v47, 2 }
 0x77f   :  { %v1540_v49 = vadd.f32 %v1539_v48, %v1538_v47 }
 0x781   :  { %v1541_v50 = vrot.slane %v1540_v49, 1 }
 0x783   :  { %v1542_v52 = vadd.f32 %v1541_v50, %v1540_v49 }
 0x785   :  { %v1544_v53 = vmul.f32 %v2087_v51, %v1542_v52 }
 0x787   :  { %1547 = vperm.xlu0 %2077, %v1544_v53  }
 0x806   :  { %v1548_v54 = vpop.permute.xlu0 %1547 }
 0x807   :  { %1550 = vst [vmem:[#allocation16] sm:$0xff] %v1548_v54 }
 0x808 PF:  { %s1551_s4 = sld [smem:[#allocation2]] }
 0x80e   :  { %p1700_p1 = scmp.ne.s32.totalorder %s1551_s4, 0 }
 0x80f   :  { %v2313_v55 = vmov (!%p1700_p1), 0.0  }
 0x810   :  { %1555 = sbr.rel (%p1700_p1) target bundleno = 2071 (0x817), region = 109  ;;  %1556 = vst [vmem:[#allocation16] sm:$0xff] (!%p1700_p1), %v2313_v55 }
 0x817 PF:  { %s2314_s10 = smov [#allocation15]  }
 0x818   :  { %s1562_s27 = sshll.u32 %s2314_s10, 4  ;;  %s1563_s27 = int_to_ptr.vmem [resolvable:$true] %s1562_s27 }
 0x819   :  { %s2242_s19 = scalar_lea.vmem %s1563_s27, 384  ;;  %p2247_p3 = scmp.lt.s32.totalorder %s1563_s27, %s1563_s27 }
 0x81a   :  { %p2243_p2 = scmp.ne.s32.totalorder %s1563_s27, %s2242_s19  ;;  %p2248_p4 = scmp.lt.s32.totalorder %s2242_s19, %s2242_s19 }
 0x81c   :  { %p2249_p5 = por %p2248_p4, %p2247_p3 }
 0x81e   :  { %p2250_p6 = pnand %p2249_p5, %p2243_p2 }
 0x820   :  { %2253 = shalt.err (!%p2250_p6)
}
 0x821   :  { %s2254_s2 = scalar_lea.hbm %s2681_s18, 384 }
 0x822   :  { %p2255_p7 = scmp.ne.s32.totalorder %s2681_s18, %s2254_s2  ;;  %p2258_p8 = scmp.lt.u32.totalorder %s2254_s2, %s2681_s18 }
 0x824   :  { %p2260_p9 = pnand %p2258_p8, %p2255_p7 }
 0x826   :  { %2263 = shalt.err (!%p2260_p9)
}
 0x827   :  { %s2315_s7 = smov 128   ;;  %s2316_s28 = smov 8  }
 0x828   :  { %1568 = dma.vmem_to_hbm [thread:$0]  %s1563_s27, 384, %s2681_s18, [#allocation5], %s2315_s7, %s2315_s7, %s2316_s28  }
 0x829   :  { %s2317_s21 = smov [#allocation16]  }
 0x82a   :  { %s1575_s26 = sshll.u32 %s2317_s21, 4  ;;  %s1576_s26 = int_to_ptr.vmem [resolvable:$true] %s1575_s26 }
 0x82b   :  { %s2264_s5 = scalar_lea.vmem %s1576_s26, 128  ;;  %p2269_p11 = scmp.lt.s32.totalorder %s1576_s26, %s1576_s26 }
 0x82c   :  { %p2265_p10 = scmp.ne.s32.totalorder %s1576_s26, %s2264_s5  ;;  %p2270_p12 = scmp.lt.s32.totalorder %s2264_s5, %s2264_s5 }
 0x82e   :  { %p2271_p13 = por %p2270_p12, %p2269_p11 }
 0x830   :  { %p2272_p0 = pnand %p2271_p13, %p2265_p10 }
 0x832   :  { %2275 = shalt.err (!%p2272_p0)
}
 0x833   :  { %s2696_s11 = sld [smem:[#allocation28_spill]] }
 0x839   :  { %s2276_s8 = scalar_lea.hbm %s2696_s11, 128 }
 0x83a   :  { %p2277_p1 = scmp.ne.s32.totalorder %s2696_s11, %s2276_s8  ;;  %p2280_p2 = scmp.lt.u32.totalorder %s2276_s8, %s2696_s11 }
 0x83c   :  { %p2282_p3 = pnand %p2280_p2, %p2277_p1 }
 0x83e   :  { %2285 = shalt.err (!%p2282_p3)
}
 0x83f   :  { %1578 = dma.vmem_to_hbm [thread:$0]  %s1576_s26, 128, %s2696_s11, [#allocation17]  }
 0x840   :  { %2294 = dma.done.wait [#allocation5], 384  }
 0x841   :  { %2295 = vsyncadd [#allocation5], 4294966912 }
 0x842   :  { %2296 = dma.done.wait [#allocation17], 128  }
 0x843   :  { %2297 = vsyncadd [#allocation17], 4294967168 }
 0x844   :  { %1585 = vsyncpa [#allocation4], 1 }
 0x845   :  { %1586 = vsyncpa [#allocation7], 1 }
 0x846   :  { %1587 = vsyncpa [#allocation10], 1 }
 0x847   :  { %1588 = vsyncpa [#allocation13], 1 }
 0x848   :  { %1589 = vsyncpa [#allocation5], 1 }
 0x849   :  { %1590 = vsyncpa [#allocation17], 1 }

</bundles_post_ra>
